<compile_context>
chip_gen: v7x
topology: tpu7x:2x2x1
jax: 0.10.0
libtpu: 0.0.40
codegen_flags: <defaults>
</compile_context>

<pallas_src>
from functools import partial

import jax
import jax.numpy as jnp
from jax.experimental import pallas as pl
from jax.experimental.pallas import tpu as pltpu


# ----------------------------- helpers ---------------------------------------

def make_divisible(v, divisor, min_value=None):
    if min_value is None:
        min_value = divisor
    new_v = max(min_value, int(v + divisor / 2) // divisor * divisor)
    if new_v < 0.9 * v:
        new_v += divisor
    return new_v


def _hardswish(x):
    return x * jnp.clip(x + 3.0, 0.0, 6.0) * (1.0 / 6.0)


def _hardsigmoid(x):
    return jnp.clip(x + 3.0, 0.0, 6.0) * (1.0 / 6.0)


def _apply_act(x, act):
    if act == "hardswish":
        return _hardswish(x)
    if act == "relu":
        return jnp.maximum(x, 0.0)
    return x


_LEFT = 8  # sublane-aligned left zero-pad of the in-VMEM depthwise scratch buffer


# ----------------------------- fused Pallas kernel ----------------------------

def _fused_irb_kernel(*refs, H, W, K, pad, hidden, bt, expand, use_se,
                      act_exp, act_dw, act_post, add_residual):
    """Bt batch elements per grid step; the whole block runs out of VMEM."""
    it = iter(refs)
    x_ref = next(it)
    if expand:
        w_exp_ref, b_exp_ref = next(it), next(it)
    w_dw_ref, b_dw_ref = next(it), next(it)
    if use_se:
        w1_ref, b1_ref, w2_ref, b2_ref = next(it), next(it), next(it), next(it)
    w_projT_ref, b_proj_ref = next(it), next(it)
    o_ref = next(it)
    pad_ref = next(it)

    M = H * W
    Hp = H + 2 * pad
    Wp = _LEFT + W + pad

    # Zero only the halo of the padded depthwise scratch; the interior is fully
    # overwritten by the activation store below.  Done every step (each core has a
    # private scratch, so this must not be gated on program_id).
    if pad > 0:
        pad_ref[0:pad, :, :] = jnp.zeros((pad, Wp, hidden), jnp.float32)
        pad_ref[pad + H:Hp, :, :] = jnp.zeros((pad, Wp, hidden), jnp.float32)
        pad_ref[pad:pad + H, _LEFT - pad:_LEFT, :] = jnp.zeros((H, pad, hidden), jnp.float32)
        pad_ref[pad:pad + H, _LEFT + W:_LEFT + W + pad, :] = (
            jnp.zeros((H, pad, hidden), jnp.float32))

    wv = w_dw_ref[...]                                       # (K, K, hidden), BN scale folded

    for b in range(bt):                                      # static per-image loop
        x_cm = x_ref[b]                                      # (Cin, M), lane-dense load

        # ---- 1x1 expand conv (BN scale folded into bf16 weights), f32 accumulation ------
        if expand:
            h = jax.lax.dot_general(
                x_cm.astype(jnp.bfloat16), w_exp_ref[...],
                dimension_numbers=(((0,), (0,)), ((), ())),
                preferred_element_type=jnp.float32)          # (M, hidden)
            h = _apply_act(h + b_exp_ref[...], act_exp)
        else:
            # inputs == hidden_dims: layout move channel-first -> channels-last (XLU only).
            h = jnp.transpose(x_cm, (1, 0)).astype(jnp.float32)   # (M, hidden)

        # ---- KxK depthwise conv (stride 1); zero halo lives in the VMEM scratch ---------
        pad_ref[pad:pad + H, _LEFT:_LEFT + W, :] = h.reshape(H, W, hidden)
        acc = None
        for kw in range(K):       # sublane-axis shift hoisted: K realigned ref slices
            c0 = _LEFT - pad + kw
            xs = pad_ref[:, c0:c0 + W, :]                    # (Hp, W, hidden), static offset
            for kh in range(K):                              # major-axis slice: free
                t = xs[kh:kh + H] * wv[kh:kh + 1, kw:kw + 1, :]
                acc = t if acc is None else acc + t          # first tap initializes acc
        d = acc.reshape(M, hidden)
        d = _apply_act(d + b_dw_ref[...], act_dw)

        # ---- squeeze-excite: pool + 2 tiny FCs + hard-sigmoid gate -----------------------
        if use_se:
            pooled = jnp.sum(d, axis=0, keepdims=True) * (1.0 / M)          # (1, hidden)
            f = jnp.dot(pooled, w1_ref[...],
                        preferred_element_type=jnp.float32) + b1_ref[...]
            f = jnp.maximum(f, 0.0)
            y = jnp.dot(f, w2_ref[...],
                        preferred_element_type=jnp.float32) + b2_ref[...]
            d = d * _hardsigmoid(y)
        g = _apply_act(d, act_post)

        # ---- 1x1 project conv (BN scale folded into bf16 weights), transposed ------------
        out = jax.lax.dot_general(
            w_projT_ref[...], g.astype(jnp.bfloat16),
            dimension_numbers=(((1,), (1,)), ((), ())),
            preferred_element_type=jnp.float32)              # (Cout, M), lane-dense store
        out = out + b_proj_ref[...]
        if add_residual:
            out = out + x_cm.astype(jnp.float32)
        o_ref[b] = out.astype(o_ref.dtype)


# ----------------------------- kernel wrapper ---------------------------------

def _const_spec(a):
    nd = a.ndim
    return pl.BlockSpec(a.shape, lambda b, _nd=nd: (0,) * _nd)


def fused_inverted_residual(x_nchw, kp, *, hidden, outputs, kernel_size, pad, stride,
                            expand, use_se, act, identity, block_batch=1):
    # TODO(synk): stride > 1 not implemented in the fused kernel.
    assert stride == 1, "only stride=1 supported in this Pallas implementation"
    assert kernel_size % 2 == 1, "even kernel_size unsupported (halo sizing assumes odd K)"
    assert pad <= _LEFT
    B, Cin, H, W = x_nchw.shape
    M = H * W
    bt = block_batch
    assert B % bt == 0
    x_cm = x_nchw.reshape(B, Cin, M)      # free reshape; channel-first, lane-dense blocks

    act_exp, act_dw, act_post = (act, None, act) if expand else (None, act, None)

    inputs = [x_cm]
    if expand:
        inputs += [kp["w_exp"], kp["b_exp"]]
    inputs += [kp["w_dw"], kp["b_dw"]]
    if use_se:
        inputs += [kp["w_fc1"], kp["b_fc1"], kp["w_fc2"], kp["b_fc2"]]
    inputs += [kp["w_projT"], kp["b_proj"]]

    in_specs = ([pl.BlockSpec((bt, Cin, M), lambda b: (b, 0, 0))]
                + [_const_spec(a) for a in inputs[1:]])

    out = pl.pallas_call(
        partial(_fused_irb_kernel, H=H, W=W, K=kernel_size, pad=pad, hidden=hidden,
                bt=bt, expand=expand, use_se=use_se, act_exp=act_exp, act_dw=act_dw,
                act_post=act_post, add_residual=identity),
        out_shape=jax.ShapeDtypeStruct((B, outputs, M), x_nchw.dtype),
        grid=(B // bt,),
        in_specs=in_specs,
        out_specs=pl.BlockSpec((bt, outputs, M), lambda b: (b, 0, 0)),
        scratch_shapes=[pltpu.VMEM((H + 2 * pad, _LEFT + W + pad, hidden), jnp.float32)],
        compiler_params=pltpu.CompilerParams(
            dimension_semantics=("parallel",),
            vmem_limit_bytes=48 * 1024 * 1024),
    )(*inputs)
    return out.reshape(B, outputs, H, W)


# ----------------------------- module ----------------------------------------

class PallasInvertedResidualBlock:
    """Pallas TPU port of feduciary InvertedResidualBlock (inference-mode BN)."""

    def __init__(self, inputs, hidden_dims, outputs, kernel_size, stride,
                 use_se, use_hardswish, key):
        self.inputs = inputs
        self.hidden_dims = hidden_dims
        self.outputs = outputs
        self.kernel_size = kernel_size
        self.stride = stride
        self.use_se = use_se
        self.act = "hardswish" if use_hardswish else "relu"
        self.identity = stride == 1 and inputs == outputs
        self.expand = inputs != hidden_dims
        self.pad = (kernel_size - 1) // 2
        eps = 1e-5

        keys = jax.random.split(key, 10)

        def bn_params(k, c):
            k1, k2, k3, k4 = jax.random.split(k, 4)
            gamma = jax.random.uniform(k1, (c,), jnp.float32, 0.5, 1.5)
            beta = 0.1 * jax.random.normal(k2, (c,), jnp.float32)
            mean = 0.1 * jax.random.normal(k3, (c,), jnp.float32)
            var = jax.random.uniform(k4, (c,), jnp.float32, 0.5, 1.5)
            scale = gamma / jnp.sqrt(var + eps)
            bias = beta - mean * scale
            return scale, bias

        p = {}
        if self.expand:
            # Conv2d(inputs, hidden, 1, bias=False): torch weight (hid, in, 1, 1) -> (in, hid)
            p["w_exp"] = 0.1 * jax.random.normal(keys[0], (inputs, hidden_dims), jnp.float32)
            p["s_exp"], p["b_exp"] = bn_params(keys[1], hidden_dims)
        # depthwise Conv2d(hid, hid, k, groups=hid): torch (hid, 1, k, k) -> (k, k, hid)
        p["w_dw"] = 0.1 * jax.random.normal(
            keys[2], (kernel_size, kernel_size, hidden_dims), jnp.float32)
        p["s_dw"], p["b_dw"] = bn_params(keys[3], hidden_dims)
        if use_se:
            mid = make_divisible(hidden_dims // 4, 8)
            p["w_fc1"] = 0.1 * jax.random.normal(keys[4], (hidden_dims, mid), jnp.float32)
            p["b_fc1"] = 0.1 * jax.random.normal(keys[5], (mid,), jnp.float32)
            p["w_fc2"] = 0.1 * jax.random.normal(keys[6], (mid, hidden_dims), jnp.float32)
            p["b_fc2"] = 0.1 * jax.random.normal(keys[7], (hidden_dims,), jnp.float32)
        # project Conv2d(hid, out, 1, bias=False): torch (out, hid, 1, 1) -> (hid, out)
        p["w_proj"] = 0.1 * jax.random.normal(keys[8], (hidden_dims, outputs), jnp.float32)
        p["s_proj"], p["b_proj"] = bn_params(keys[9], outputs)
        self.params = p                       # raw params (used by the pure-JAX reference)
        self.kparams = self._fold_kernel_params()   # BN-folded, bf16 weights for the kernel

    def _fold_kernel_params(self):
        """Host-side: fold BN scales into conv weights, pre-cast MXU weights to bf16."""
        p = self.params
        kp = {}
        if self.expand:
            kp["w_exp"] = (p["w_exp"] * p["s_exp"][None, :]).astype(jnp.bfloat16)
            kp["b_exp"] = p["b_exp"].reshape(1, self.hidden_dims)
        kp["w_dw"] = p["w_dw"] * p["s_dw"][None, None, :]    # f32: depthwise runs on the VPU
        kp["b_dw"] = p["b_dw"].reshape(1, self.hidden_dims)
        if self.use_se:
            mid = p["w_fc1"].shape[1]
            kp["w_fc1"] = p["w_fc1"]
            kp["b_fc1"] = p["b_fc1"].reshape(1, mid)
            kp["w_fc2"] = p["w_fc2"]
            kp["b_fc2"] = p["b_fc2"].reshape(1, self.hidden_dims)
        kp["w_projT"] = (p["w_proj"].T * p["s_proj"][:, None]).astype(jnp.bfloat16)
        kp["b_proj"] = p["b_proj"].reshape(self.outputs, 1)
        return kp

    def __call__(self, x_nchw, block_batch=1):
        return fused_inverted_residual(
            x_nchw, self.kparams,
            hidden=self.hidden_dims, outputs=self.outputs,
            kernel_size=self.kernel_size, pad=self.pad, stride=self.stride,
            expand=self.expand, use_se=self.use_se, act=self.act,
            identity=self.identity, block_batch=block_batch)


# ----------------------------- pure-JAX reference ------------------------------

def reference_forward(block, x_nchw):
    p = block.params
    x = jnp.transpose(x_nchw, (0, 2, 3, 1))  # NHWC

    def pw(h, w, s, b, act):
        y = jnp.einsum("bhwc,cd->bhwd", h, w)
        return _apply_act(y * s + b, act)

    def dw(h, w, s, b, act):
        C = h.shape[-1]
        rhs = w[:, :, None, :]  # HWIO with I=1
        y = jax.lax.conv_general_dilated(
            h, rhs, window_strides=(block.stride, block.stride),
            padding=[(block.pad, block.pad), (block.pad, block.pad)],
            dimension_numbers=("NHWC", "HWIO", "NHWC"),
            feature_group_count=C)
        return _apply_act(y * s + b, act)

    def se(h, act):
        pooled = jnp.mean(h, axis=(1, 2))                       # (B, C)
        f = jnp.maximum(pooled @ p["w_fc1"] + p["b_fc1"], 0.0)
        y = _hardsigmoid(f @ p["w_fc2"] + p["b_fc2"])
        return _apply_act(h * y[:, None, None, :], act)

    if block.expand:
        h = pw(x, p["w_exp"], p["s_exp"], p["b_exp"], block.act)
        h = dw(h, p["w_dw"], p["s_dw"], p["b_dw"], None)
        h = se(h, block.act) if block.use_se else _apply_act(h, block.act)
    else:
        h = dw(x, p["w_dw"], p["s_dw"], p["b_dw"], block.act)
        if block.use_se:
            h = se(h, None)
    out = pw(h, p["w_proj"], p["s_proj"], p["b_proj"], None)
    if block.identity:
        out = out + x
    return jnp.transpose(out, (0, 3, 1, 2))


# ----------------------------- main -------------------------------------------

if __name__ == "__main__":
    key = jax.random.PRNGKey(0)
    kx, kp = jax.random.split(key)

    # expand branch + SE + hardswish + residual (stride=1, Cin == Cout)
    B, Cin, H, W = 2, 16, 16, 16
    hidden, Cout, K, stride = 32, 16, 3, 1

    block = PallasInvertedResidualBlock(Cin, hidden, Cout, K, stride,
                                        use_se=True, use_hardswish=True, key=kp)
    x = jax.random.normal(kx, (B, Cin, H, W), jnp.float32)

    # block_batch=1 keeps grid=(2,) so both v7x TensorCores get one image each.
    out = jax.block_until_ready(block(x, block_batch=1))
    ref = jax.block_until_ready(reference_forward(block, x))

    assert out.shape == (B, Cout, H, W)
    max_err = float(jnp.max(jnp.abs(out - ref)))
    # The kernel uses bf16 MXU weights with BN scales folded in (f32 accumulation) while
    # the reference is pure f32, so allow a few bf16 ulps of headroom; real bugs produce
    # O(0.1 - 1) errors here.
    assert max_err < 3e-2, f"mismatch vs reference: {max_err}"
    print("KERNEL_OK")
</pallas_src>

<mosaic_0001>
module attributes {stable_mosaic.version = 11 : i64} {
  func.func @_fused_irb_kernel(%arg0: i32, %arg1: memref<1x16x256xf32, #tpu.memory_space<vmem>>, %arg2: memref<16x32xbf16, #tpu.memory_space<vmem>>, %arg3: memref<1x32xf32, #tpu.memory_space<vmem>>, %arg4: memref<3x3x32xf32, #tpu.memory_space<vmem>>, %arg5: memref<1x32xf32, #tpu.memory_space<vmem>>, %arg6: memref<32x8xf32, #tpu.memory_space<vmem>>, %arg7: memref<1x8xf32, #tpu.memory_space<vmem>>, %arg8: memref<8x32xf32, #tpu.memory_space<vmem>>, %arg9: memref<1x32xf32, #tpu.memory_space<vmem>>, %arg10: memref<16x32xbf16, #tpu.memory_space<vmem>>, %arg11: memref<16x1xf32, #tpu.memory_space<vmem>>, %arg12: memref<1x16x256xf32, #tpu.memory_space<vmem>>, %arg13: memref<18x25x32xf32, #tpu.memory_space<vmem>>) attributes {dimension_semantics = [#tpu.dimension_semantics<parallel>], iteration_bounds = array<i64: 2>, scalar_prefetch = 0 : i64, scratch_operands = 1 : i64, tpu.core_type = #tpu.core_type<tc>, window_params = [{transform_indices = @transform_0, window_bounds = array<i64: 1, 16, 256>}, {pipeline_mode = #tpu.pipeline_mode<synchronous>, transform_indices = @transform_1, window_bounds = array<i64: 16, 32>}, {pipeline_mode = #tpu.pipeline_mode<synchronous>, transform_indices = @transform_2, window_bounds = array<i64: 1, 32>}, {pipeline_mode = #tpu.pipeline_mode<synchronous>, transform_indices = @transform_3, window_bounds = array<i64: 3, 3, 32>}, {pipeline_mode = #tpu.pipeline_mode<synchronous>, transform_indices = @transform_4, window_bounds = array<i64: 1, 32>}, {pipeline_mode = #tpu.pipeline_mode<synchronous>, transform_indices = @transform_5, window_bounds = array<i64: 32, 8>}, {pipeline_mode = #tpu.pipeline_mode<synchronous>, transform_indices = @transform_6, window_bounds = array<i64: 1, 8>}, {pipeline_mode = #tpu.pipeline_mode<synchronous>, transform_indices = @transform_7, window_bounds = array<i64: 8, 32>}, {pipeline_mode = #tpu.pipeline_mode<synchronous>, transform_indices = @transform_8, window_bounds = array<i64: 1, 32>}, {pipeline_mode = #tpu.pipeline_mode<synchronous>, transform_indices = @transform_9, window_bounds = array<i64: 16, 32>}, {pipeline_mode = #tpu.pipeline_mode<synchronous>, transform_indices = @transform_10, window_bounds = array<i64: 16, 1>}, {transform_indices = @transform_11, window_bounds = array<i64: 1, 16, 256>}]} {
    %cst = arith.constant 0.000000e+00 : f32
    %0 = vector.broadcast %cst : f32 to vector<1x25x32xf32>
    %c0 = arith.constant 0 : index
    %c0_0 = arith.constant 0 : index
    %c0_1 = arith.constant 0 : index
    %1 = vector.load %arg13[%c0, %c0_0, %c0_1] : memref<18x25x32xf32, #tpu.memory_space<vmem>>, vector<1x25x32xf32>
    tpu.vector_store %arg13[%c0, %c0_0, %c0_1], %0 {strides = array<i32>} : memref<18x25x32xf32, #tpu.memory_space<vmem>>, vector<1x25x32xf32>,
    %cst_2 = arith.constant 0.000000e+00 : f32
    %2 = vector.broadcast %cst_2 : f32 to vector<1x25x32xf32>
    %c17 = arith.constant 17 : index
    %c0_3 = arith.constant 0 : index
    %c0_4 = arith.constant 0 : index
    %3 = vector.load %arg13[%c17, %c0_3, %c0_4] : memref<18x25x32xf32, #tpu.memory_space<vmem>>, vector<1x25x32xf32>
    tpu.vector_store %arg13[%c17, %c0_3, %c0_4], %2 {strides = array<i32>} : memref<18x25x32xf32, #tpu.memory_space<vmem>>, vector<1x25x32xf32>,
    %cst_5 = arith.constant 0.000000e+00 : f32
    %4 = vector.broadcast %cst_5 : f32 to vector<16x1x32xf32>
    %c1 = arith.constant 1 : index
    %c7 = arith.constant 7 : index
    %c0_6 = arith.constant 0 : index
    %5 = vector.load %arg13[%c1, %c7, %c0_6] : memref<18x25x32xf32, #tpu.memory_space<vmem>>, vector<16x1x32xf32>
    tpu.vector_store %arg13[%c1, %c7, %c0_6], %4 {strides = array<i32>} : memref<18x25x32xf32, #tpu.memory_space<vmem>>, vector<16x1x32xf32>,
    %cst_7 = arith.constant 0.000000e+00 : f32
    %6 = vector.broadcast %cst_7 : f32 to vector<16x1x32xf32>
    %c1_8 = arith.constant 1 : index
    %c24 = arith.constant 24 : index
    %c0_9 = arith.constant 0 : index
    %7 = vector.load %arg13[%c1_8, %c24, %c0_9] : memref<18x25x32xf32, #tpu.memory_space<vmem>>, vector<16x1x32xf32>
    tpu.vector_store %arg13[%c1_8, %c24, %c0_9], %6 {strides = array<i32>} : memref<18x25x32xf32, #tpu.memory_space<vmem>>, vector<16x1x32xf32>,
    %c0_10 = arith.constant 0 : index
    %c0_11 = arith.constant 0 : index
    %c0_12 = arith.constant 0 : index
    %8 = vector.load %arg4[%c0_10, %c0_11, %c0_12] : memref<3x3x32xf32, #tpu.memory_space<vmem>>, vector<3x3x32xf32>
    %c0_13 = arith.constant 0 : index
    %c0_14 = arith.constant 0 : index
    %c0_15 = arith.constant 0 : index
    %9 = vector.load %arg1[%c0_13, %c0_14, %c0_15] : memref<1x16x256xf32, #tpu.memory_space<vmem>>, vector<1x16x256xf32>
    %10 = vector.shape_cast %9 : vector<1x16x256xf32> to vector<16x256xf32>
    %11 = arith.truncf %10 : vector<16x256xf32> to vector<16x256xbf16>
    %c0_16 = arith.constant 0 : index
    %c0_17 = arith.constant 0 : index
    %12 = vector.load %arg2[%c0_16, %c0_17] : memref<16x32xbf16, #tpu.memory_space<vmem>>, vector<16x32xbf16>
    %cst_18 = arith.constant dense<0.000000e+00> : vector<256x32xf32>
    %13 = tpu.matmul %11, %12, %cst_18 {dimension_numbers = #tpu.dot_dimension_numbers<[0], [0], [1], [1], [0, 1, 1, 1], [], []>} : vector<16x256xbf16>, vector<16x32xbf16>, vector<256x32xf32> -> vector<256x32xf32>
    %c0_19 = arith.constant 0 : index
    %c0_20 = arith.constant 0 : index
    %14 = vector.load %arg3[%c0_19, %c0_20] : memref<1x32xf32, #tpu.memory_space<vmem>>, vector<1x32xf32>
    %15 = vector.broadcast %14 : vector<1x32xf32> to vector<256x32xf32>
    %16 = arith.addf %13, %15 : vector<256x32xf32>
    %cst_21 = arith.constant 3.000000e+00 : f32
    %17 = vector.broadcast %cst_21 : f32 to vector<256x32xf32>
    %18 = arith.addf %16, %17 : vector<256x32xf32>
    %cst_22 = arith.constant 0.000000e+00 : f32
    %cst_23 = arith.constant 6.000000e+00 : f32
    %19 = vector.broadcast %cst_22 : f32 to vector<256x32xf32>
    %20 = arith.maximumf %19, %18 : vector<256x32xf32>
    %21 = vector.broadcast %cst_23 : f32 to vector<256x32xf32>
    %22 = arith.minimumf %21, %20 : vector<256x32xf32>
    %23 = arith.mulf %16, %22 : vector<256x32xf32>
    %cst_24 = arith.constant 0.166666672 : f32
    %24 = vector.broadcast %cst_24 : f32 to vector<256x32xf32>
    %25 = arith.mulf %23, %24 : vector<256x32xf32>
    %26 = vector.shape_cast %25 : vector<256x32xf32> to vector<16x16x32xf32>
    %c1_25 = arith.constant 1 : index
    %c8 = arith.constant 8 : index
    %c0_26 = arith.constant 0 : index
    %27 = vector.load %arg13[%c1_25, %c8, %c0_26] : memref<18x25x32xf32, #tpu.memory_space<vmem>>, vector<16x16x32xf32>
    tpu.vector_store %arg13[%c1_25, %c8, %c0_26], %26 {strides = array<i32>} : memref<18x25x32xf32, #tpu.memory_space<vmem>>, vector<16x16x32xf32>,
    %c0_27 = arith.constant 0 : index
    %c7_28 = arith.constant 7 : index
    %c0_29 = arith.constant 0 : index
    %28 = vector.load %arg13[%c0_27, %c7_28, %c0_29] : memref<18x25x32xf32, #tpu.memory_space<vmem>>, vector<18x16x32xf32>
    %29 = vector.extract_strided_slice %28 {offsets = [0, 0, 0], sizes = [16, 16, 32], strides = [1, 1, 1]} : vector<18x16x32xf32> to vector<16x16x32xf32>
    %30 = vector.extract_strided_slice %8 {offsets = [0, 0, 0], sizes = [1, 1, 32], strides = [1, 1, 1]} : vector<3x3x32xf32> to vector<1x1x32xf32>
    %31 = vector.broadcast %30 : vector<1x1x32xf32> to vector<16x16x32xf32>
    %32 = arith.mulf %29, %31 : vector<16x16x32xf32>
    %33 = vector.extract_strided_slice %28 {offsets = [1, 0, 0], sizes = [16, 16, 32], strides = [1, 1, 1]} : vector<18x16x32xf32> to vector<16x16x32xf32>
    %34 = vector.extract_strided_slice %8 {offsets = [1, 0, 0], sizes = [1, 1, 32], strides = [1, 1, 1]} : vector<3x3x32xf32> to vector<1x1x32xf32>
    %35 = vector.broadcast %34 : vector<1x1x32xf32> to vector<16x16x32xf32>
    %36 = arith.mulf %33, %35 : vector<16x16x32xf32>
    %37 = arith.addf %32, %36 : vector<16x16x32xf32>
    %38 = vector.extract_strided_slice %28 {offsets = [2, 0, 0], sizes = [16, 16, 32], strides = [1, 1, 1]} : vector<18x16x32xf32> to vector<16x16x32xf32>
    %39 = vector.extract_strided_slice %8 {offsets = [2, 0, 0], sizes = [1, 1, 32], strides = [1, 1, 1]} : vector<3x3x32xf32> to vector<1x1x32xf32>
    %40 = vector.broadcast %39 : vector<1x1x32xf32> to vector<16x16x32xf32>
    %41 = arith.mulf %38, %40 : vector<16x16x32xf32>
    %42 = arith.addf %37, %41 : vector<16x16x32xf32>
    %c0_30 = arith.constant 0 : index
    %c8_31 = arith.constant 8 : index
    %c0_32 = arith.constant 0 : index
    %43 = vector.load %arg13[%c0_30, %c8_31, %c0_32] : memref<18x25x32xf32, #tpu.memory_space<vmem>>, vector<18x16x32xf32>
    %44 = vector.extract_strided_slice %43 {offsets = [0, 0, 0], sizes = [16, 16, 32], strides = [1, 1, 1]} : vector<18x16x32xf32> to vector<16x16x32xf32>
    %45 = vector.extract_strided_slice %8 {offsets = [0, 1, 0], sizes = [1, 1, 32], strides = [1, 1, 1]} : vector<3x3x32xf32> to vector<1x1x32xf32>
    %46 = vector.broadcast %45 : vector<1x1x32xf32> to vector<16x16x32xf32>
    %47 = arith.mulf %44, %46 : vector<16x16x32xf32>
    %48 = arith.addf %42, %47 : vector<16x16x32xf32>
    %49 = vector.extract_strided_slice %43 {offsets = [1, 0, 0], sizes = [16, 16, 32], strides = [1, 1, 1]} : vector<18x16x32xf32> to vector<16x16x32xf32>
    %50 = vector.extract_strided_slice %8 {offsets = [1, 1, 0], sizes = [1, 1, 32], strides = [1, 1, 1]} : vector<3x3x32xf32> to vector<1x1x32xf32>
    %51 = vector.broadcast %50 : vector<1x1x32xf32> to vector<16x16x32xf32>
    %52 = arith.mulf %49, %51 : vector<16x16x32xf32>
    %53 = arith.addf %48, %52 : vector<16x16x32xf32>
    %54 = vector.extract_strided_slice %43 {offsets = [2, 0, 0], sizes = [16, 16, 32], strides = [1, 1, 1]} : vector<18x16x32xf32> to vector<16x16x32xf32>
    %55 = vector.extract_strided_slice %8 {offsets = [2, 1, 0], sizes = [1, 1, 32], strides = [1, 1, 1]} : vector<3x3x32xf32> to vector<1x1x32xf32>
    %56 = vector.broadcast %55 : vector<1x1x32xf32> to vector<16x16x32xf32>
    %57 = arith.mulf %54, %56 : vector<16x16x32xf32>
    %58 = arith.addf %53, %57 : vector<16x16x32xf32>
    %c0_33 = arith.constant 0 : index
    %c9 = arith.constant 9 : index
    %c0_34 = arith.constant 0 : index
    %59 = vector.load %arg13[%c0_33, %c9, %c0_34] : memref<18x25x32xf32, #tpu.memory_space<vmem>>, vector<18x16x32xf32>
    %60 = vector.extract_strided_slice %59 {offsets = [0, 0, 0], sizes = [16, 16, 32], strides = [1, 1, 1]} : vector<18x16x32xf32> to vector<16x16x32xf32>
    %61 = vector.extract_strided_slice %8 {offsets = [0, 2, 0], sizes = [1, 1, 32], strides = [1, 1, 1]} : vector<3x3x32xf32> to vector<1x1x32xf32>
    %62 = vector.broadcast %61 : vector<1x1x32xf32> to vector<16x16x32xf32>
    %63 = arith.mulf %60, %62 : vector<16x16x32xf32>
    %64 = arith.addf %58, %63 : vector<16x16x32xf32>
    %65 = vector.extract_strided_slice %59 {offsets = [1, 0, 0], sizes = [16, 16, 32], strides = [1, 1, 1]} : vector<18x16x32xf32> to vector<16x16x32xf32>
    %66 = vector.extract_strided_slice %8 {offsets = [1, 2, 0], sizes = [1, 1, 32], strides = [1, 1, 1]} : vector<3x3x32xf32> to vector<1x1x32xf32>
    %67 = vector.broadcast %66 : vector<1x1x32xf32> to vector<16x16x32xf32>
    %68 = arith.mulf %65, %67 : vector<16x16x32xf32>
    %69 = arith.addf %64, %68 : vector<16x16x32xf32>
    %70 = vector.extract_strided_slice %59 {offsets = [2, 0, 0], sizes = [16, 16, 32], strides = [1, 1, 1]} : vector<18x16x32xf32> to vector<16x16x32xf32>
    %71 = vector.extract_strided_slice %8 {offsets = [2, 2, 0], sizes = [1, 1, 32], strides = [1, 1, 1]} : vector<3x3x32xf32> to vector<1x1x32xf32>
    %72 = vector.broadcast %71 : vector<1x1x32xf32> to vector<16x16x32xf32>
    %73 = arith.mulf %70, %72 : vector<16x16x32xf32>
    %74 = arith.addf %69, %73 : vector<16x16x32xf32>
    %75 = vector.shape_cast %74 : vector<16x16x32xf32> to vector<256x32xf32>
    %c0_35 = arith.constant 0 : index
    %c0_36 = arith.constant 0 : index
    %76 = vector.load %arg5[%c0_35, %c0_36] : memref<1x32xf32, #tpu.memory_space<vmem>>, vector<1x32xf32>
    %77 = vector.broadcast %76 : vector<1x32xf32> to vector<256x32xf32>
    %78 = arith.addf %75, %77 : vector<256x32xf32>
    %cst_37 = arith.constant dense<0.000000e+00> : vector<32xf32>
    %79 = vector.multi_reduction <add>, %78, %cst_37 [0] : vector<256x32xf32> to vector<32xf32>
    %80 = vector.shape_cast %79 : vector<32xf32> to vector<1x32xf32>
    %cst_38 = arith.constant 3.906250e-03 : f32
    %81 = vector.broadcast %cst_38 : f32 to vector<1x32xf32>
    %82 = arith.mulf %80, %81 : vector<1x32xf32>
    %c0_39 = arith.constant 0 : index
    %c0_40 = arith.constant 0 : index
    %83 = vector.load %arg6[%c0_39, %c0_40] : memref<32x8xf32, #tpu.memory_space<vmem>>, vector<32x8xf32>
    %cst_41 = arith.constant dense<0.000000e+00> : vector<1x8xf32>
    %84 = tpu.matmul %82, %83, %cst_41 {dimension_numbers = #tpu.dot_dimension_numbers<[1], [0], [0], [1], [0, 0, 1, 1], [], []>} : vector<1x32xf32>, vector<32x8xf32>, vector<1x8xf32> -> vector<1x8xf32>
    %c0_42 = arith.constant 0 : index
    %c0_43 = arith.constant 0 : index
    %85 = vector.load %arg7[%c0_42, %c0_43] : memref<1x8xf32, #tpu.memory_space<vmem>>, vector<1x8xf32>
    %86 = arith.addf %84, %85 : vector<1x8xf32>
    %cst_44 = arith.constant 0.000000e+00 : f32
    %87 = vector.broadcast %cst_44 : f32 to vector<1x8xf32>
    %88 = arith.maximumf %86, %87 : vector<1x8xf32>
    %c0_45 = arith.constant 0 : index
    %c0_46 = arith.constant 0 : index
    %89 = vector.load %arg8[%c0_45, %c0_46] : memref<8x32xf32, #tpu.memory_space<vmem>>, vector<8x32xf32>
    %cst_47 = arith.constant dense<0.000000e+00> : vector<1x32xf32>
    %90 = tpu.matmul %88, %89, %cst_47 {dimension_numbers = #tpu.dot_dimension_numbers<[1], [0], [0], [1], [0, 0, 1, 1], [], []>} : vector<1x8xf32>, vector<8x32xf32>, vector<1x32xf32> -> vector<1x32xf32>
    %c0_48 = arith.constant 0 : index
    %c0_49 = arith.constant 0 : index
    %91 = vector.load %arg9[%c0_48, %c0_49] : memref<1x32xf32, #tpu.memory_space<vmem>>, vector<1x32xf32>
    %92 = arith.addf %90, %91 : vector<1x32xf32>
    %cst_50 = arith.constant 3.000000e+00 : f32
    %93 = vector.broadcast %cst_50 : f32 to vector<1x32xf32>
    %94 = arith.addf %92, %93 : vector<1x32xf32>
    %cst_51 = arith.constant 0.000000e+00 : f32
    %cst_52 = arith.constant 6.000000e+00 : f32
    %95 = vector.broadcast %cst_51 : f32 to vector<1x32xf32>
    %96 = arith.maximumf %95, %94 : vector<1x32xf32>
    %97 = vector.broadcast %cst_52 : f32 to vector<1x32xf32>
    %98 = arith.minimumf %97, %96 : vector<1x32xf32>
    %cst_53 = arith.constant 0.166666672 : f32
    %99 = vector.broadcast %cst_53 : f32 to vector<1x32xf32>
    %100 = arith.mulf %98, %99 : vector<1x32xf32>
    %101 = vector.broadcast %100 : vector<1x32xf32> to vector<256x32xf32>
    %102 = arith.mulf %78, %101 : vector<256x32xf32>
    %cst_54 = arith.constant 3.000000e+00 : f32
    %103 = vector.broadcast %cst_54 : f32 to vector<256x32xf32>
    %104 = arith.addf %102, %103 : vector<256x32xf32>
    %cst_55 = arith.constant 0.000000e+00 : f32
    %cst_56 = arith.constant 6.000000e+00 : f32
    %105 = vector.broadcast %cst_55 : f32 to vector<256x32xf32>
    %106 = arith.maximumf %105, %104 : vector<256x32xf32>
    %107 = vector.broadcast %cst_56 : f32 to vector<256x32xf32>
    %108 = arith.minimumf %107, %106 : vector<256x32xf32>
    %109 = arith.mulf %102, %108 : vector<256x32xf32>
    %cst_57 = arith.constant 0.166666672 : f32
    %110 = vector.broadcast %cst_57 : f32 to vector<256x32xf32>
    %111 = arith.mulf %109, %110 : vector<256x32xf32>
    %c0_58 = arith.constant 0 : index
    %c0_59 = arith.constant 0 : index
    %112 = vector.load %arg10[%c0_58, %c0_59] : memref<16x32xbf16, #tpu.memory_space<vmem>>, vector<16x32xbf16>
    %113 = arith.truncf %111 : vector<256x32xf32> to vector<256x32xbf16>
    %cst_60 = arith.constant dense<0.000000e+00> : vector<16x256xf32>
    %114 = tpu.matmul %112, %113, %cst_60 {dimension_numbers = #tpu.dot_dimension_numbers<[1], [1], [0], [0], [0, 0, 1, 0], [], []>} : vector<16x32xbf16>, vector<256x32xbf16>, vector<16x256xf32> -> vector<16x256xf32>
    %c0_61 = arith.constant 0 : index
    %c0_62 = arith.constant 0 : index
    %115 = vector.load %arg11[%c0_61, %c0_62] : memref<16x1xf32, #tpu.memory_space<vmem>>, vector<16x1xf32>
    %116 = vector.broadcast %115 : vector<16x1xf32> to vector<16x256xf32>
    %117 = arith.addf %114, %116 : vector<16x256xf32>
    %118 = arith.addf %117, %10 : vector<16x256xf32>
    %c0_63 = arith.constant 0 : index
    %c0_64 = arith.constant 0 : index
    %c0_65 = arith.constant 0 : index
    %119 = vector.load %arg12[%c0_63, %c0_64, %c0_65] : memref<1x16x256xf32, #tpu.memory_space<vmem>>, vector<1x16x256xf32>
    %120 = vector.shape_cast %119 : vector<1x16x256xf32> to vector<16x256xf32>
    %121 = vector.shape_cast %118 : vector<16x256xf32> to vector<1x16x256xf32>
    tpu.vector_store %arg12[%c0_63, %c0_64, %c0_65], %121 {strides = array<i32>} : memref<1x16x256xf32, #tpu.memory_space<vmem>>, vector<1x16x256xf32>,
    return
  }
  func.func @transform_0(%arg0: i32) -> (i32, i32, i32) {
    %c0_i32 = arith.constant 0 : i32
    %c0_i32_0 = arith.constant 0 : i32
    %c0_i32_1 = arith.constant 0 : i32
    return %arg0, %c0_i32, %c0_i32_0 : i32, i32, i32
  }
  func.func @transform_1(%arg0: i32) -> (i32, i32) {
    %c0_i32 = arith.constant 0 : i32
    %c0_i32_0 = arith.constant 0 : i32
    %c0_i32_1 = arith.constant 0 : i32
    return %c0_i32, %c0_i32_0 : i32, i32
  }
  func.func @transform_2(%arg0: i32) -> (i32, i32) {
    %c0_i32 = arith.constant 0 : i32
    %c0_i32_0 = arith.constant 0 : i32
    %c0_i32_1 = arith.constant 0 : i32
    return %c0_i32, %c0_i32_0 : i32, i32
  }
  func.func @transform_3(%arg0: i32) -> (i32, i32, i32) {
    %c0_i32 = arith.constant 0 : i32
    %c0_i32_0 = arith.constant 0 : i32
    %c0_i32_1 = arith.constant 0 : i32
    %c0_i32_2 = arith.constant 0 : i32
    return %c0_i32, %c0_i32_0, %c0_i32_1 : i32, i32, i32
  }
  func.func @transform_4(%arg0: i32) -> (i32, i32) {
    %c0_i32 = arith.constant 0 : i32
    %c0_i32_0 = arith.constant 0 : i32
    %c0_i32_1 = arith.constant 0 : i32
    return %c0_i32, %c0_i32_0 : i32, i32
  }
  func.func @transform_5(%arg0: i32) -> (i32, i32) {
    %c0_i32 = arith.constant 0 : i32
    %c0_i32_0 = arith.constant 0 : i32
    %c0_i32_1 = arith.constant 0 : i32
    return %c0_i32, %c0_i32_0 : i32, i32
  }
  func.func @transform_6(%arg0: i32) -> (i32, i32) {
    %c0_i32 = arith.constant 0 : i32
    %c0_i32_0 = arith.constant 0 : i32
    %c0_i32_1 = arith.constant 0 : i32
    return %c0_i32, %c0_i32_0 : i32, i32
  }
  func.func @transform_7(%arg0: i32) -> (i32, i32) {
    %c0_i32 = arith.constant 0 : i32
    %c0_i32_0 = arith.constant 0 : i32
    %c0_i32_1 = arith.constant 0 : i32
    return %c0_i32, %c0_i32_0 : i32, i32
  }
  func.func @transform_8(%arg0: i32) -> (i32, i32) {
    %c0_i32 = arith.constant 0 : i32
    %c0_i32_0 = arith.constant 0 : i32
    %c0_i32_1 = arith.constant 0 : i32
    return %c0_i32, %c0_i32_0 : i32, i32
  }
  func.func @transform_9(%arg0: i32) -> (i32, i32) {
    %c0_i32 = arith.constant 0 : i32
    %c0_i32_0 = arith.constant 0 : i32
    %c0_i32_1 = arith.constant 0 : i32
    return %c0_i32, %c0_i32_0 : i32, i32
  }
  func.func @transform_10(%arg0: i32) -> (i32, i32) {
    %c0_i32 = arith.constant 0 : i32
    %c0_i32_0 = arith.constant 0 : i32
    %c0_i32_1 = arith.constant 0 : i32
    return %c0_i32, %c0_i32_0 : i32, i32
  }
  func.func @transform_11(%arg0: i32) -> (i32, i32, i32) {
    %c0_i32 = arith.constant 0 : i32
    %c0_i32_0 = arith.constant 0 : i32
    %c0_i32_1 = arith.constant 0 : i32
    return %arg0, %c0_i32, %c0_i32_0 : i32, i32, i32
  }
}

</mosaic_0001>

<bundles_post_ra>
// kernel: tpu_custom_call.1
= control target key start
LH: loop header
LB: loop body
LE: loop exit
PB: predicated region body
PF: predicated region fallthrough
CT: control target
= control target key end

     0   :  { %16 = vsyncpa [#allocation4], 0  ;;  %s4120_s0 = inlined_call_operand.hbm [shape: f32[2,16,256], index: 0, kind: input, shape index: {}]   ;;  %s4121_s1 = inlined_call_operand.vmem [shape: bf16[16,32], index: 1, kind: input, shape index: {}]   ;;  %s4122_s2 = inlined_call_operand.vmem [shape: f32[1,32], index: 2, kind: input, shape index: {}]   ;;  %s4123_s3 = inlined_call_operand.vmem [shape: f32[3,3,32], index: 3, kind: input, shape index: {}]   ;;  %s4124_s4 = inlined_call_operand.vmem [shape: f32[1,32], index: 4, kind: input, shape index: {}]   ;;  %s4125_s5 = inlined_call_operand.vmem [shape: f32[32,8], index: 5, kind: input, shape index: {}]   ;;  %s4126_s6 = inlined_call_operand.vmem [shape: f32[1,8], index: 6, kind: input, shape index: {}]   ;;  %s4127_s7 = inlined_call_operand.vmem [shape: f32[8,32], index: 7, kind: input, shape index: {}]   ;;  %s4128_s8 = inlined_call_operand.vmem [shape: f32[1,32], index: 8, kind: input, shape index: {}]   ;;  %s4129_s9 = inlined_call_operand.vmem [shape: bf16[16,32], index: 9, kind: input, shape index: {}]   ;;  %s4130_s10 = inlined_call_operand.vmem [shape: f32[16,1], index: 10, kind: input, shape index: {}]   ;;  %s4131_s11 = inlined_call_operand.hbm [shape: f32[2,16,256], index: 11, kind: output, shape index: {}]  }
   0x1   :  { %18 = vsyncpa [#allocation4 + $0x1], 0 }
   0x2   :  { %19 = vsyncpa [#allocation5], 0 }
   0x3   :  { %21 = vsyncpa [#allocation5 + $0x1], 0  ;;  %s2661_s17 = smov 0   ;;  %s2663_s18 = smov 0  }
   0x4   :  { %s2665_s19 = smov 0   ;;  %s2667_s20 = smov 0  }
   0x5 LB: > { %4159 = sst [smem:[#allocation9_spill]] %s2585_s19  ;;  %s2682_s21 = sadd.s32 4294967295, %s2589_s20   ;;  %s2589_s20 = sphi %s2667_s20, %s4263_s20   ;;  %s2585_s19 = sphi %s2665_s19, %s4262_s19   ;;  %s2581_s18 = sphi %s2663_s18, %s4261_s18   ;;  %s2577_s17 = sphi %s2661_s17, %s4260_s17  }
   0x6   : > { %s2284_s22 = sadd.s32 4294967294, %s2589_s20   ;;  %s2686_s23 = sadd.s32 1, %s2589_s20  }
   0x7   : > { %s34_s24 = sadd.s32 1, %s2585_s19  ;;  %s31_s25 = ssub.s32 %s2589_s20, %s2686_s23 }
   0x8   : > { %p41_p0 = scmp.ne.s32.totalorder %s2585_s19, %s2581_s18  ;;  %p32_p1 = scmp.eq.s32.totalorder %s31_s25, 0 }
   0x9   : > { %p42_p2 = scmp.eq.s32.totalorder %s2589_s20, 0  ;;  %p47_p3 = scmp.ne.s32.totalorder %s2581_s18, %s2577_s17 }
   0xa   : > { %p48_p4 = scmp.eq.s32.totalorder %s2682_s21, 0  ;;  %p281_p7 = scmp.eq.s32.totalorder %s2682_s21, 1 }
   0xb   : > { %s2698_s26 = scalar_select %p32_p1, %s2585_s19, %s34_s24  }
   0xc   : > { %p2700_p5 = por %p42_p2, %p41_p0  ;;  %p2704_p6 = por %p48_p4, %p47_p3 }
   0xd   : > { %4160 = sst [smem:[#allocation10_spill]] %s2698_s26  ;;  %p287_p8 = scmp.eq.s32.totalorder %s2284_s22, 1 }
   0xe   : > { %p2441_p10 = scmp.lt.s32.totalorder %s2589_s20, 2  ;;  %p2711_p11 = por %p281_p7, %p41_p0 }
   0xf   : > { %p2715_p12 = por %p287_p8, %p47_p3  ;;  %s337_s12 = sand.u32 1, %s2585_s19  }
  0x10   : > { %s4163_s29 = scalar_select %p2711_p11, 1, 0 }
  0x11   : > { %s4164_s30 = scalar_select %p2715_p12, 1, 0 }
  0x12   : > { %s2321_s13 = sshll.u32 %s2589_s20, 9  ;;  %s2287_s14 = sshll.u32 %s337_s12, 5 }
  0x13   : > { %s2724_s24 = scalar_lea.hbm %s4120_s0, %s2321_s13  ;;  %s341_s22 = scalar_lea.vmem [#allocation3], %s2287_s14 }
  0x14   : > { %s348_s25 = sshll.u32 %s341_s22, 4  ;;  %p2728_p13 = pnand %p2441_p10, %p2700_p5  ;;  %s2732_s25 = int_to_ptr.vmem [resolvable:$true] %s348_s25 }
  0x15   : > { %s2734_s19 = scalar_lea.sflag [#allocation4], %s337_s12  ;;  %s2493_s15 = scalar_lea.hbm %s2724_s24, 512 }
  0x16   : > { %p2494_p0 = scmp.ne.s32.totalorder %s2724_s24, %s2493_s15  ;;  %p2495_p1 = pneg %p2728_p13 }
  0x17   : > { %s2498_s14 = scalar_lea.hbm %s4120_s0, 1024  ;;  %p2499_p4 = scmp.lt.u32.totalorder %s2724_s24, %s4120_s0 }
  0x18   : > { %p2496_p2 = pnand %p2495_p1, %p2494_p0  ;;  %p2500_p5 = scmp.lt.u32.totalorder %s2498_s14, %s2493_s15 }
  0x19   : > { %p2502_p8 = scmp.lt.u32.totalorder %s2493_s15, %s2724_s24 }
  0x1a   : > { %p2497_p3 = pneg %p2496_p2  ;;  %p2501_p7 = por %p2500_p5, %p2499_p4 }
  0x1c   : > { %p2503_p10 = por %p2502_p8, %p2501_p7 }
  0x1e   : > { %p2504_p9 = pnand %p2503_p10, %p2497_p3 }
  0x20   : > { %2507 = shalt.err (!%p2504_p9)
}
  0x21   : > { %s2508_s12 = scalar_lea.vmem %s2732_s25, 512  ;;  %s2591_s13 = smov [#allocation3]  }
  0x22   : > { %p2509_p0 = scmp.ne.s32.totalorder %s2732_s25, %s2508_s12  ;;  %s2513_s27 = sshll.u32 %s2591_s13, 4  ;;  %s2514_s27 = int_to_ptr.vmem [resolvable:$false] %s2513_s27 }
  0x23   : > { %s2515_s16 = scalar_lea.vmem %s2514_s27, 1024  ;;  %p2516_p11 = scmp.lt.s32.totalorder %s2732_s25, %s2514_s27 }
  0x24   : > { %p2511_p2 = pnand %p2509_p0, %p2495_p1  ;;  %p2517_p4 = scmp.lt.s32.totalorder %s2515_s16, %s2508_s12 }
  0x26   : > { %p2512_p12 = pneg %p2511_p2  ;;  %p2518_p5 = por %p2517_p4, %p2516_p11 }
  0x28   : > { %p2519_p7 = pnand %p2518_p5, %p2512_p12 }
  0x2a   : > { %2522 = shalt.err (!%p2519_p7)
}
  0x2b   : > { %s2592_s15 = smov 256   ;;  %s2593_s14 = smov 16  }
  0x2c   : > { %2436 = dma.hbm_to_vmem [thread:$0]  (!%p2728_p13), %s2724_s24, 512, %s2732_s25, %s2734_s19, %s2592_s15, %s2592_s15, %s2593_s14  }
  0x2d   : > { %p2290_p9 = scmp.ge.s32.totalorder %s2589_s20, 1  ;;  %p356_p1 = scmp.lt.s32.totalorder %s2589_s20, 3 }
  0x2f   : > { %p357_p3 = pnand %p2290_p9, %p356_p1 }
  0x31   : > { %360 = sbr.rel (%p357_p3) target bundleno = 1387 (0x56b), region = 64 }
  0x38   : > { %s2765_s22 = sand.u32 1, %s2581_s18  }
  0x39   : > { %s2291_s12 = sshll.u32 %s2765_s22, 5  ;;  %s363_s13 = scalar_lea.sflag [#allocation4], %s2765_s22 }
  0x3a   : > { %s2771_s27 = scalar_lea.vmem [#allocation3], %s2291_s12 }
  0x3b   : > { %2568 = dma.done.wait (%p2704_p6), %s363_s13, 512  }
  0x3c   : > { %2570 = vsyncadd (%p2704_p6), %s363_s13, 4294966784  ;;  %v453_v0 = vld [vmem:[%s2771_s27] sm:$0xff]  ;;  %v455_v1 = vld [vmem:[%s2771_s27 + $0x10] sm:$0xff]  ;;  %vm406_vm0 = vcmask 261120   ;;  %vm410_vm1 = vcmask 253952   ;;  %v4134_v7 = vmov 0.0   ;;  %v944_v61 = vlaneseq }
  0x3d   : > { %v457_v2 = vpack.c.bf16 %v455_v1, %v453_v0  ;;  %v2485_v3 = vld [vmem:[%s4121_s1] sm:$0xff]   ;;  %v454_v4 = vld [vmem:[%s2771_s27 + $0x8] sm:$0xff]  ;;  %v456_v5 = vld [vmem:[%s2771_s27 + $0x18] sm:$0xff]  ;;  %419 = vst.msk [vmem:[#allocation2 + $0x47] sm:$0x1] %vm410_vm1, %v4134_v7  ;;  %vm506_vm2 = vcmask 130048  }
  0x3e   : > { %2365 = vmatprep.subr.bf16.mxu0 %v2485_v3  ;;  %v458_v6 = vpack.c.bf16 %v456_v5, %v454_v4  ;;  %407 = vst.msk [vmem:[#allocation2] sm:$0xff] %vm406_vm0, %v4134_v7  ;;  %408 = vst.msk [vmem:[#allocation2 + $0x8] sm:$0xff] %vm406_vm0, %v4134_v7  ;;  %v2883_v24 = vld [vmem:[%s4122_s2] ss:$0 sm:$0xff]  ;;  %vm2596_vm3 = vmmov 0   ;;  %vm1786_vm4 = vcmask 64512  }
  0x3f   : > { %468 = vxpose.xlu0.c.b16.start.end [1/1] (short) %v457_v2, 128  ;;  %2366 = vmatpush3.bf16.msra.mxu0 %v2485_v3  ;;  %409 = vst.msk [vmem:[#allocation2 + $0x10] sm:$0xff] %vm406_vm0, %v4134_v7  ;;  %413 = vst.msk [vmem:[#allocation2 + $0x220] sm:$0xff] %vm406_vm0, %v4134_v7  ;;  %s404_s19 = scalar_lea.vmem [#allocation6], %s2291_s12  ;;  %s2322_s28 = sshll.u32 %s2682_s21, 9 }
  0x40   : > { %411 = vst.msk [vmem:[#allocation2 + $0x18] sm:$0x1] %vm410_vm1, %v4134_v7  ;;  %416 = vst.msk [vmem:[#allocation2 + $0x238] sm:$0x1] %vm410_vm1, %v4134_v7  ;;  %s2211_s26 = sshll.u32 %s404_s19, 4  ;;  %s4075_s21 = scalar_lea.hbm %s4131_s11, %s2322_s28  ;;  %s4068_s26 = int_to_ptr.vmem [resolvable:$true] %s2211_s26 }
  0x41   : > { %414 = vst.msk [vmem:[#allocation2 + $0x228] sm:$0xff] %vm406_vm0, %v4134_v7  ;;  %415 = vst.msk [vmem:[#allocation2 + $0x230] sm:$0xff] %vm406_vm0, %v4134_v7  ;;  %s2198_s25 = scalar_lea.sflag [#allocation5], %s2765_s22  ;;  %s2523_s16 = scalar_lea.vmem %s4068_s26, 512 }
  0x42   : > { %418 = vst.msk [vmem:[#allocation2 + $0x27] sm:$0x1] %vm410_vm1, %v4134_v7  ;;  %420 = vst.msk [vmem:[#allocation2 + $0x67] sm:$0x1] %vm410_vm1, %v4134_v7  ;;  %p2524_p6 = scmp.ne.s32.totalorder %s4068_s26, %s2523_s16  ;;  %p4255_p11 = scmp.ne.s32.totalorder %s4163_s29, 0 }
  0x43   : > { %421 = vst.msk [vmem:[#allocation2 + $0x87] sm:$0x1] %vm410_vm1, %v4134_v7  ;;  %422 = vst.msk [vmem:[#allocation2 + $0xa7] sm:$0x1] %vm410_vm1, %v4134_v7  ;;  %s2598_s15 = smov [#allocation6]  }
  0x44   : > { %423 = vst.msk [vmem:[#allocation2 + $0xc7] sm:$0x1] %vm410_vm1, %v4134_v7  ;;  %424 = vst.msk [vmem:[#allocation2 + $0xe7] sm:$0x1] %vm410_vm1, %v4134_v7  ;;  %p2525_p12 = pnand %p2524_p6, %p4255_p11  ;;  %s2527_s14 = sshll.u32 %s2598_s15, 4  ;;  %s2528_s14 = int_to_ptr.vmem [resolvable:$false] %s2527_s14 }
  0x45   : > { %425 = vst.msk [vmem:[#allocation2 + $0x107] sm:$0x1] %vm410_vm1, %v4134_v7  ;;  %426 = vst.msk [vmem:[#allocation2 + $0x127] sm:$0x1] %vm410_vm1, %v4134_v7  ;;  %s2529_s13 = scalar_lea.vmem %s2528_s14, 1024  ;;  %p2530_p8 = scmp.lt.s32.totalorder %s4068_s26, %s2528_s14 }
  0x46   : > { %427 = vst.msk [vmem:[#allocation2 + $0x147] sm:$0x1] %vm410_vm1, %v4134_v7  ;;  %428 = vst.msk [vmem:[#allocation2 + $0x167] sm:$0x1] %vm410_vm1, %v4134_v7  ;;  %p2526_p13 = pneg %p2525_p12  ;;  %p2531_p10 = scmp.lt.s32.totalorder %s2529_s13, %s2523_s16 }
  0x47   : > { %429 = vst.msk [vmem:[#allocation2 + $0x187] sm:$0x1] %vm410_vm1, %v4134_v7  ;;  %430 = vst.msk [vmem:[#allocation2 + $0x1a7] sm:$0x1] %vm410_vm1, %v4134_v7 }
  0x48   : > { %431 = vst.msk [vmem:[#allocation2 + $0x1c7] sm:$0x1] %vm410_vm1, %v4134_v7  ;;  %432 = vst.msk [vmem:[#allocation2 + $0x1e7] sm:$0x1] %vm410_vm1, %v4134_v7  ;;  %p2532_p0 = por %p2531_p10, %p2530_p8 }
  0x49   : > { %433 = vst.msk [vmem:[#allocation2 + $0x207] sm:$0x1] %vm410_vm1, %v4134_v7  ;;  %434 = vst.msk [vmem:[#allocation2 + $0x38] sm:$0x1] %vm410_vm1, %v4134_v7 }
  0x4a   : > { %435 = vst.msk [vmem:[#allocation2 + $0x58] sm:$0x1] %vm410_vm1, %v4134_v7  ;;  %436 = vst.msk [vmem:[#allocation2 + $0x78] sm:$0x1] %vm410_vm1, %v4134_v7  ;;  %p2533_p2 = pnand %p2532_p0, %p2526_p13 }
  0x4b   : > { %437 = vst.msk [vmem:[#allocation2 + $0x98] sm:$0x1] %vm410_vm1, %v4134_v7  ;;  %438 = vst.msk [vmem:[#allocation2 + $0xb8] sm:$0x1] %vm410_vm1, %v4134_v7 }
  0x4c   : > { %439 = vst.msk [vmem:[#allocation2 + $0xd8] sm:$0x1] %vm410_vm1, %v4134_v7  ;;  %440 = vst.msk [vmem:[#allocation2 + $0xf8] sm:$0x1] %vm410_vm1, %v4134_v7 }
  0x4d   : > { %441 = vst.msk [vmem:[#allocation2 + $0x118] sm:$0x1] %vm410_vm1, %v4134_v7  ;;  %442 = vst.msk [vmem:[#allocation2 + $0x138] sm:$0x1] %vm410_vm1, %v4134_v7 }
  0x4e   : > { %443 = vst.msk [vmem:[#allocation2 + $0x158] sm:$0x1] %vm410_vm1, %v4134_v7  ;;  %444 = vst.msk [vmem:[#allocation2 + $0x178] sm:$0x1] %vm410_vm1, %v4134_v7 }
  0x4f   : > { %445 = vst.msk [vmem:[#allocation2 + $0x198] sm:$0x1] %vm410_vm1, %v4134_v7  ;;  %446 = vst.msk [vmem:[#allocation2 + $0x1b8] sm:$0x1] %vm410_vm1, %v4134_v7 }
  0x50   : > { %447 = vst.msk [vmem:[#allocation2 + $0x1d8] sm:$0x1] %vm410_vm1, %v4134_v7  ;;  %448 = vst.msk [vmem:[#allocation2 + $0x1f8] sm:$0x1] %vm410_vm1, %v4134_v7 }
  0x51   : > { %449 = vst.msk [vmem:[#allocation2 + $0x218] sm:$0x1] %vm410_vm1, %v4134_v7 }
  0x5c   : > { %484 = vxpose.xlu0.c.b16.start.end [1/1] (short) %v458_v6, 128 }
  0xa5   : > { %v476_v8 = vpop.trf.xlu0 }
  0xa6   : > { %2367 = vmatprep.mubr.msk.bf16.mxu0 %vm506_vm2, %v476_v8  ;;  %v945_v8 = vshrl.u32 %v944_v61, 7 }
  0xa9   : > { %v477_v9 = vpop.trf.xlu0 }
  0xaa   : > { %2368 = vmatmul.mubr.msk.bf16.vlgmr.msra.gmra.mrb[0].mxu0 %vm506_vm2, %v477_v9 }
  0xad   : > { %v478_v10 = vpop.trf.xlu0 }
  0xae   : > { %2371 = vmatprep.mubr.msk.bf16.mxu0 %vm506_vm2, %v478_v10 }
  0xb1   : > { %v479_v11 = vpop.trf.xlu0 }
  0xb2   : > { %2372 = vmatmul.mubr.msk.bf16.gmra.mrb[4].mxu0 %vm506_vm2, %v479_v11 }
  0xb5   : > { %v480_v12 = vpop.trf.xlu0 }
  0xb6   : > { %2375 = vmatprep.mubr.msk.bf16.mxu0 %vm506_vm2, %v480_v12 }
  0xb9   : > { %v481_v13 = vpop.trf.xlu0 }
  0xba   : > { %2376 = vmatmul.mubr.msk.bf16.gmra.mrb[8].mxu0 %vm506_vm2, %v481_v13 }
  0xbd   : > { %v482_v14 = vpop.trf.xlu0 }
  0xbe   : > { %2379 = vmatprep.mubr.msk.bf16.mxu0 %vm506_vm2, %v482_v14 }
  0xc1   : > { %v483_v15 = vpop.trf.xlu0 }
  0xc2   : > { %2380 = vmatmul.mubr.msk.bf16.gmra.mrb[12].mxu0 %vm506_vm2, %v483_v15 }
  0xc5   : > { %v492_v16 = vpop.trf.xlu0 }
  0xc6   : > { %2383 = vmatprep.mubr.msk.bf16.mxu0 %vm506_vm2, %v492_v16  ;;  %v2902_v16 = vsub.s32 0, %v945_v8 }
  0xc8   : > { %4166 = vst [vmem:[#allocation11_spill] sm:$0xff] %v2902_v16 }
  0xc9   : > { %v493_v17 = vpop.trf.xlu0 }
  0xca   : > { %2384 = vmatmul.mubr.msk.bf16.gmra.mrb[16].mxu0 %vm506_vm2, %v493_v17  ;;  %v450_v17 = vld [vmem:[%s4123_s3] sm:$0x7] }
  0xcd   : > { %v494_v18 = vpop.trf.xlu0 }
  0xce   : > { %2387 = vmatprep.mubr.msk.bf16.mxu0 %vm506_vm2, %v494_v18 }
  0xd1   : > { %v495_v19 = vpop.trf.xlu0 }
  0xd2   : > { %2388 = vmatmul.mubr.msk.bf16.gmra.mrb[20].mxu0 %vm506_vm2, %v495_v19 }
  0xd5   : > { %v496_v20 = vpop.trf.xlu0 }
  0xd6   : > { %2391 = vmatprep.mubr.msk.bf16.mxu0 %vm506_vm2, %v496_v20  ;;  %v2911_v20 = vld [vmem:[%s4123_s3 + $0x4] sm:$0x7] }
  0xd9   : > { %v497_v21 = vpop.trf.xlu0 }
  0xda   : > { %2392 = vmatmul.mubr.msk.bf16.gmra.mrb[24].mxu0 %vm506_vm2, %v497_v21 }
  0xdd   : > { %v498_v22 = vpop.trf.xlu0 }
  0xde   : > { %2395 = vmatprep.mubr.msk.bf16.mxu0 %vm506_vm2, %v498_v22 }
  0xe1   : > { %v499_v23 = vpop.trf.xlu0 }
  0xe2   : > { %2396 = vmatmul.mubr.msk.bf16.gmra.mrb[28].mxu0 %vm506_vm2, %v499_v23  ;;  %v2918_v23 = vrot.slane %v450_v17, %v2902_v16 }
 0x17d   : > { %v2369_v25 = vpop.f32.mrb[0].mxu0 }
 0x17e   : > { %v598_v26 = vadd.f32 %v2369_v25, %v2883_v24  ;;  %v589_v27 = vpop.f32.mrb[1].mxu0 }
 0x17f   : > { %v590_v28 = vadd.f32 %v2883_v24, %v589_v27  ;;  %v2370_v29 = vpop.f32.mrb[2].mxu0  ;;  %v908_v27 = vld [vmem:[#allocation2 + $0x7] sm:$0xff] }
 0x180   : > { %v718_v30 = vadd.f32 3.0, %v598_v26  ;;  %v601_v31 = vadd.f32 %v2370_v29, %v2883_v24  ;;  %v592_v32 = vpop.f32.mrb[3].mxu0 }
 0x181   : > { %v716_v33 = vadd.f32 3.0, %v590_v28  ;;  %v593_v34 = vadd.f32 %v2883_v24, %v592_v32 }
 0x182   : > { %v750_v35 = vmax.f32 %v718_v30, 0.0  ;;  %v719_v36 = vadd.f32 3.0, %v601_v31 }
 0x183   : > { %v748_v37 = vmax.f32 %v716_v33, 0.0  ;;  %v717_v38 = vadd.f32 3.0, %v593_v34 }
 0x184   : > { %v782_v39 = vmin.f32 %v750_v35, 6.0  ;;  %v751_v40 = vmax.f32 %v719_v36, 0.0  ;;  %v948_v35 = vmul.f32 %v2918_v23, %v908_v27 }
 0x185   : > { %v780_v41 = vmin.f32 %v748_v37, 6.0  ;;  %v749_v42 = vmax.f32 %v717_v38, 0.0  ;;  %v2373_v43 = vpop.f32.mrb[4].mxu0 }
 0x186   : > { %v814_v44 = vmul.f32 %v782_v39, %v598_v26  ;;  %v783_v45 = vmin.f32 %v751_v40, 6.0  ;;  %v614_v46 = vadd.f32 %v2373_v43, %v2883_v24  ;;  %v605_v47 = vpop.f32.mrb[5].mxu0  ;;  %v2924_v26 = vrot.slane %v2911_v20, %v2902_v16 }
 0x187   : > { %v812_v48 = vmul.f32 %v780_v41, %v590_v28  ;;  %v781_v49 = vmin.f32 %v749_v42, 6.0  ;;  %v606_v50 = vadd.f32 %v2883_v24, %v605_v47  ;;  %v2374_v51 = vpop.f32.mrb[6].mxu0  ;;  %v1154_v40 = vsub.s32 1, %v945_v8 }
 0x188   : > { %v846_v52 = vmul.f32 0.16666667, %v814_v44  ;;  %v815_v53 = vmul.f32 %v783_v45, %v601_v31  ;;  %v722_v54 = vadd.f32 3.0, %v614_v46  ;;  %v608_v55 = vpop.f32.mrb[7].mxu0  ;;  %v617_v1 = vadd.f32 %v2374_v51, %v2883_v24 }
 0x189   : > { %v844_v56 = vmul.f32 0.16666667, %v812_v48  ;;  %v813_v57 = vmul.f32 %v781_v49, %v593_v34  ;;  %v720_v58 = vadd.f32 3.0, %v606_v50  ;;  %v609_v2 = vadd.f32 %v2883_v24, %v608_v55  ;;  %v452_v34 = vld [vmem:[%s4123_s3 + $0x8] sm:$0x7] }
 0x18a   : > { %878 = vst.msk [vmem:[#allocation2 + $0x48] sm:$0xff] %vm406_vm0, %v846_v52  ;;  %v847_v59 = vmul.f32 0.16666667, %v815_v53  ;;  %v754_v60 = vmax.f32 %v722_v54, 0.0  ;;  %v723_v12 = vadd.f32 3.0, %v617_v1  ;;  %v2938_v43 = vrot.slane %v452_v34, %v2902_v16  ;;  %v1116_v55 = vld [vmem:[#allocation2 + $0x8] sm:$0xff] }
 0x18b   : > { %876 = vst.msk [vmem:[#allocation2 + $0x28] sm:$0xff] %vm406_vm0, %v844_v56  ;;  %v845_v62 = vmul.f32 0.16666667, %v813_v57  ;;  %v752_v63 = vmax.f32 %v720_v58, 0.0  ;;  %v721_v13 = vadd.f32 3.0, %v609_v2  ;;  %v2946_v54 = vrot.slane %v450_v17, %v1154_v40 }
 0x18c   : > { %879 = vst.msk [vmem:[#allocation2 + $0x50] sm:$0xff] %vm406_vm0, %v847_v59  ;;  %v786_v0 = vmin.f32 %v754_v60, 6.0  ;;  %v755_v18 = vmax.f32 %v723_v12, 0.0  ;;  %v1394_v56 = vsub.s32 2, %v945_v8 }
 0x18d   : > { %877 = vst.msk [vmem:[#allocation2 + $0x30] sm:$0xff] %vm406_vm0, %v845_v62  ;;  %v784_v3 = vmin.f32 %v752_v63, 6.0  ;;  %v2377_v4 = vpop.f32.mrb[8].mxu0  ;;  %v753_v19 = vmax.f32 %v721_v13, 0.0  ;;  %v1356_v13 = vld [vmem:[#allocation2 + $0x9] sm:$0xff] }
 0x18e   : > { %v818_v5 = vmul.f32 %v786_v0, %v614_v46  ;;  %v621_v6 = vpop.f32.mrb[9].mxu0  ;;  %v787_v28 = vmin.f32 %v755_v18, 6.0  ;;  %v630_v30 = vadd.f32 %v2377_v4, %v2883_v24  ;;  %v909_v46 = vld [vmem:[#allocation2 + $0xf] sm:$0xff]  ;;  %v1156_v0 = vmul.f32 %v2946_v54, %v1116_v55 }
 0x18f   : > { %v816_v9 = vmul.f32 %v784_v3, %v606_v50  ;;  %v2897_v10 = vpop.f32.mrb[10].mxu0  ;;  %v785_v29 = vmin.f32 %v753_v19, 6.0  ;;  %v622_v33 = vadd.f32 %v2883_v24, %v621_v6  ;;  %v949_v59 = vmul.f32 %v2918_v23, %v909_v46 }
 0x190   : > { %v850_v11 = vmul.f32 0.16666667, %v818_v5  ;;  %v2899_v14 = vpop.f32.mrb[11].mxu0  ;;  %v819_v37 = vmul.f32 %v787_v28, %v617_v1  ;;  %v726_v39 = vadd.f32 3.0, %v630_v30  ;;  %v2957_v3 = vrot.slane %v452_v34, %v1154_v40  ;;  %v1117_v5 = vld [vmem:[#allocation2 + $0x10] sm:$0xff] }
 0x191   : > { %v848_v15 = vmul.f32 0.16666667, %v816_v9  ;;  %v817_v38 = vmul.f32 %v785_v29, %v609_v2  ;;  %v724_v41 = vadd.f32 3.0, %v622_v33  ;;  %v912_v45 = vld [vmem:[#allocation2 + $0x47] sm:$0xff]  ;;  %v2955_v2 = vrot.slane %v2911_v20, %v1154_v40 }
 0x192   : > { %882 = vst.msk [vmem:[#allocation2 + $0x88] sm:$0xff] %vm406_vm0, %v850_v11  ;;  %v910_v32 = vld [vmem:[#allocation2 + $0x27] sm:$0xff]  ;;  %v851_v50 = vmul.f32 0.16666667, %v819_v37  ;;  %v758_v52 = vmax.f32 %v726_v39, 0.0  ;;  %v1052_v58 = vmul.f32 %v2938_v43, %v912_v45  ;;  %v2961_v8 = vadd.f32 %v2897_v10, %v2883_v24 }
 0x193   : > { %880 = vst.msk [vmem:[#allocation2 + $0x68] sm:$0xff] %vm406_vm0, %v848_v15  ;;  %v984_v36 = vmul.f32 %v2924_v26, %v910_v32  ;;  %v849_v51 = vmul.f32 0.16666667, %v817_v38  ;;  %v756_v57 = vmax.f32 %v724_v41, 0.0  ;;  %v913_v4 = vld [vmem:[#allocation2 + $0x4f] sm:$0xff]  ;;  %v2965_v11 = vrot.slane %v450_v17, %v1394_v56 }
 0x194   : > { %v911_v47 = vld [vmem:[#allocation2 + $0x2f] sm:$0xff]  ;;  %883 = vst.msk [vmem:[#allocation2 + $0x90] sm:$0xff] %vm406_vm0, %v851_v50  ;;  %v790_v61 = vmin.f32 %v758_v52, 6.0  ;;  %v2971_v27 = vadd.f32 %v2883_v24, %v2899_v14  ;;  %v986_v29 = vmul.f32 %v2924_v26, %v912_v45  ;;  %v950_v10 = vmul.f32 %v2918_v23, %v910_v32 }
 0x195   : > { %v2913_v21 = vpop.f32.mrb[12].mxu0  ;;  %v1016_v49 = vadd.f32 %v984_v36, %v948_v35  ;;  %v985_v60 = vmul.f32 %v2924_v26, %v911_v47  ;;  %881 = vst.msk [vmem:[#allocation2 + $0x70] sm:$0xff] %vm406_vm0, %v849_v51  ;;  %v788_v62 = vmin.f32 %v756_v57, 6.0  ;;  %v1357_v15 = vld [vmem:[#allocation2 + $0x11] sm:$0xff]  ;;  %v2978_v17 = vrot.slane %v2911_v20, %v1394_v56  ;;  %v1120_v36 = vld [vmem:[#allocation2 + $0x48] sm:$0xff] }
 0x196   : > { %v2915_v22 = vpop.f32.mrb[13].mxu0  ;;  %v822_v1 = vmul.f32 %v790_v61, %v630_v30  ;;  %v1118_v30 = vld [vmem:[#allocation2 + $0x28] sm:$0xff]  ;;  %v1053_v38 = vmul.f32 %v2938_v43, %v913_v4  ;;  %v2983_v39 = vrot.slane %v452_v34, %v1394_v56  ;;  %v1157_v14 = vmul.f32 %v2946_v54, %v1117_v5  ;;  %v1121_v57 = vld [vmem:[#allocation2 + $0x50] sm:$0xff] }
 0x197   : > { %v2920_v25 = vpop.f32.mrb[14].mxu0  ;;  %v1084_v63 = vadd.f32 %v1052_v58, %v1016_v49  ;;  %v820_v6 = vmul.f32 %v788_v62, %v622_v33  ;;  %v1017_v12 = vadd.f32 %v985_v60, %v949_v59  ;;  %4168 = vst [vmem:[#allocation13_spill] sm:$0xff] %v2978_v17  ;;  %v1396_v32 = vmul.f32 %v2965_v11, %v1356_v13  ;;  %v1119_v5 = vld [vmem:[#allocation2 + $0x30] sm:$0xff] }
 0x198   : > { %v2927_v31 = vpop.f32.mrb[15].mxu0  ;;  %v854_v19 = vmul.f32 0.16666667, %v822_v1  ;;  %4170 = vst [vmem:[#allocation15_spill] sm:$0xff] %v2983_v39  ;;  %v2991_v20 = vmul.f32 %v2965_v11, %v1357_v15  ;;  %v727_v46 = vadd.f32 3.0, %v2961_v8  ;;  %v952_v34 = vmul.f32 %v2918_v23, %v912_v45  ;;  %v1361_v1 = vld [vmem:[#allocation2 + $0x51] sm:$0xff] }
 0x199   : > { %v852_v33 = vmul.f32 0.16666667, %v820_v6  ;;  %v1188_v37 = vadd.f32 %v1156_v0, %v1084_v63  ;;  %v1224_v49 = vmul.f32 %v2955_v2, %v1118_v30  ;;  %v1085_v50 = vadd.f32 %v1053_v38, %v1017_v12  ;;  %v1360_v63 = vld [vmem:[#allocation2 + $0x49] sm:$0xff] }
 0x19a   : > { %v2967_v18 = vld [vmem:[#allocation2 + $0x67] sm:$0xff]  ;;  %886 = vst.msk [vmem:[#allocation2 + $0xc8] sm:$0xff] %vm406_vm0, %v854_v19  ;;  %v725_v51 = vadd.f32 3.0, %v2971_v27  ;;  %v3001_v52 = vmul.f32 %v2946_v54, %v1120_v36  ;;  %v1018_v55 = vadd.f32 %v986_v29, %v950_v10  ;;  %v987_v56 = vmul.f32 %v2924_v26, %v913_v4 }
 0x19b   : > { %v1054_v41 = vmul.f32 %v2938_v43, %v2967_v18  ;;  %884 = vst.msk [vmem:[#allocation2 + $0xa8] sm:$0xff] %vm406_vm0, %v852_v33  ;;  %v951_v58 = vmul.f32 %v2918_v23, %v911_v47  ;;  %v1226_v60 = vmul.f32 %v2955_v2, %v1120_v36  ;;  %v1292_v45 = vmul.f32 %v2957_v3, %v1120_v36 }
 0x19c   : > { %v3005_v59 = vld [vmem:[#allocation2 + $0x6f] sm:$0xff]  ;;  %v1158_v61 = vmul.f32 %v2946_v54, %v1118_v30  ;;  %v1256_v62 = vadd.f32 %v1224_v49, %v1188_v37  ;;  %v953_v0 = vmul.f32 %v2918_v23, %v913_v4  ;;  %v988_v6 = vmul.f32 %v2924_v26, %v2967_v18  ;;  %v916_v49 = vld [vmem:[#allocation2 + $0x87] sm:$0xff] }
 0x19d   : > { %v2935_v42 = vpop.f32.mrb[16].mxu0  ;;  %v1086_v12 = vadd.f32 %v1054_v41, %v1018_v55  ;;  %v759_v13 = vmax.f32 %v727_v46, 0.0  ;;  %v3016_v15 = vmul.f32 %v2946_v54, %v1121_v57  ;;  %v1189_v19 = vadd.f32 %v1157_v14, %v1085_v50  ;;  %v1358_v55 = vld [vmem:[#allocation2 + $0x29] sm:$0xff] }
 0x19e   : > { %v2940_v44 = vpop.f32.mrb[17].mxu0  ;;  %v1055_v29 = vmul.f32 %v2938_v43, %v3005_v59  ;;  %v757_v10 = vmax.f32 %v725_v51, 0.0  ;;  %v1227_v4 = vmul.f32 %v2955_v2, %v1121_v57  ;;  %v1293_v33 = vmul.f32 %v2957_v3, %v1121_v57 }
 0x19f   : > { %v2942_v48 = vpop.f32.mrb[18].mxu0  ;;  %v3025_v36 = vmul.f32 %v2965_v11, %v1360_v63  ;;  %v1019_v37 = vadd.f32 %v987_v56, %v951_v58  ;;  %v1324_v41 = vadd.f32 %v1292_v45, %v1256_v62  ;;  %v3030_v46 = vmul.f32 %v2965_v11, %v1361_v1 }
 0x1a0   : > { %v2944_v53 = vpop.f32.mrb[19].mxu0  ;;  %v1225_v14 = vmul.f32 %v2955_v2, %v1119_v5  ;;  %v989_v50 = vmul.f32 %v2924_v26, %v3005_v59  ;;  %v1020_v57 = vadd.f32 %v988_v6, %v952_v34  ;;  %v1190_v7 = vadd.f32 %v1158_v61, %v1086_v12  ;;  %v3049_v61 = vld [vmem:[#allocation2 + $0x8f] sm:$0xff] }
 0x1a1   : > { %v1087_v16 = vadd.f32 %v1055_v29, %v1019_v37  ;;  %v3038_v56 = vmul.f32 %v2978_v17, %v1360_v63  ;;  %v3041_v58 = vmul.f32 %v2978_v17, %v1361_v1  ;;  %v789_v62 = vmin.f32 %v757_v10, 6.0  ;;  %v1359_v6 = vld [vmem:[#allocation2 + $0x31] sm:$0xff]  ;;  %v3053_v37 = vld [vmem:[#allocation2 + $0x68] sm:$0xff] }
 0x1a2   : > { %v1257_v45 = vadd.f32 %v1225_v14, %v1189_v19  ;;  %v1056_v34 = vmul.f32 %v2938_v43, %v916_v49  ;;  %v1398_v12 = vmul.f32 %v2965_v11, %v1358_v55  ;;  %v1464_v29 = vmul.f32 %v2978_v17, %v1358_v55  ;;  %v1124_v55 = vld [vmem:[#allocation2 + $0x88] sm:$0xff] }
 0x1a3   : > { %v1021_v19 = vadd.f32 %v989_v50, %v953_v0  ;;  %v1399_v0 = vmul.f32 %v2965_v11, %v1359_v6  ;;  %v3080_v50 = vld [vmem:[#allocation2 + $0x70] sm:$0xff] }
 0x1a4   : > { %v1088_v10 = vadd.f32 %v1056_v34, %v1020_v57  ;;  %v990_v34 = vmul.f32 %v2924_v26, %v916_v49 }
 0x1a5   : > { %v2963_v9 = vpop.f32.mrb[20].mxu0 }
 0x1a6   : > { %v2973_v28 = vpop.f32.mrb[21].mxu0 }
 0x1a7   : > { %4167 = vst [vmem:[#allocation12_spill] sm:$0xff] %v2973_v28  ;;  %v2980_v35 = vpop.f32.mrb[22].mxu0  ;;  %v821_v28 = vmul.f32 %v789_v62, %v2971_v27  ;;  %v1465_v27 = vmul.f32 %v2978_v17, %v1359_v6 }
 0x1a8   : > { %4169 = vst [vmem:[#allocation14_spill] sm:$0xff] %v2980_v35  ;;  %v2987_v40 = vpop.f32.mrb[23].mxu0  ;;  %v1057_v35 = vmul.f32 %v2938_v43, %v3049_v61 }
 0x1a9   : > { %4171 = vst [vmem:[#allocation16_spill] sm:$0xff] %v2987_v40 }
 0x1ad   : > { %v3013_v47 = vpop.f32.mrb[24].mxu0 }
 0x1ae   : > { %4172 = vst [vmem:[#allocation17_spill] sm:$0xff] %v3013_v47  ;;  %v3020_v30 = vpop.f32.mrb[25].mxu0  ;;  %v3045_v47 = vmul.f32 %v2983_v39, %v1361_v1 }
 0x1af   : > { %4173 = vst [vmem:[#allocation18_spill] sm:$0xff] %v3020_v30  ;;  %v3027_v38 = vpop.f32.mrb[26].mxu0  ;;  %v791_v30 = vmin.f32 %v759_v13, 6.0  ;;  %v1428_v13 = vadd.f32 %v1396_v32, %v1324_v41  ;;  %v646_v32 = vadd.f32 %v2913_v21, %v2883_v24 }
 0x1b0   : > { %4174 = vst [vmem:[#allocation19_spill] sm:$0xff] %v3027_v38  ;;  %v3035_v51 = vpop.f32.mrb[27].mxu0  ;;  %v1532_v38 = vmul.f32 %v2983_v39, %v1360_v63  ;;  %v1258_v63 = vadd.f32 %v1226_v60, %v1190_v7  ;;  %v1294_v7 = vmul.f32 %v2957_v3, %v3053_v37 }
 0x1b1   : > { %4175 = vst [vmem:[#allocation20_spill] sm:$0xff] %v3035_v51  ;;  %v1159_v51 = vmul.f32 %v2946_v54, %v1119_v5  ;;  %v823_v1 = vmul.f32 %v791_v30, %v2961_v8  ;;  %v1325_v5 = vadd.f32 %v1293_v33, %v1257_v45  ;;  %v3074_v8 = vadd.f32 %v2920_v25, %v2883_v24 }
 0x1b2   : > { %v1496_v21 = vadd.f32 %v1464_v29, %v1428_v13  ;;  %v956_v30 = vmul.f32 %v2918_v23, %v916_v49  ;;  %v1089_v33 = vadd.f32 %v1057_v35, %v1021_v19  ;;  %v1326_v57 = vadd.f32 %v1294_v7, %v1258_v63  ;;  %v3100_v49 = vld [vmem:[#allocation2 + $0xa7] sm:$0xff]  ;;  %v3106_v7 = vld [vmem:[%s4124_s4] ss:$0 sm:$0xff] }
 0x1b3   : > { %v1191_v14 = vadd.f32 %v1159_v51, %v1087_v16  ;;  %v3070_v16 = vadd.f32 %v2883_v24, %v2915_v22  ;;  %v1192_v22 = vadd.f32 %v3001_v52, %v1088_v10  ;;  %v855_v62 = vmul.f32 0.16666667, %v823_v1 }
 0x1b4   : > { %v1429_v25 = vadd.f32 %v2991_v20, %v1325_v5  ;;  %v730_v6 = vadd.f32 3.0, %v646_v32  ;;  %v1228_v13 = vmul.f32 %v2955_v2, %v3053_v37  ;;  %v1295_v35 = vmul.f32 %v2957_v3, %v3080_v50 }
 0x1b5   : > { %v3056_v40 = vpop.f32.mrb[28].mxu0  ;;  %v1259_v45 = vadd.f32 %v1227_v4, %v1191_v14  ;;  %887 = vst.msk [vmem:[#allocation2 + $0xd0] sm:$0xff] %vm406_vm0, %v855_v62  ;;  %v728_v29 = vadd.f32 3.0, %v3070_v16  ;;  %v731_v52 = vadd.f32 3.0, %v3074_v8  ;;  %v3095_v4 = vmul.f32 %v2946_v54, %v1124_v55 }
 0x1b6   : > { %4176 = vst [vmem:[#allocation21_spill] sm:$0xff] %v3056_v40  ;;  %v3063_v41 = vpop.f32.mrb[29].mxu0  ;;  %v954_v20 = vmul.f32 %v2918_v23, %v2967_v18  ;;  %v762_v19 = vmax.f32 %v730_v6, 0.0  ;;  %v1564_v10 = vadd.f32 %v1532_v38, %v1496_v21  ;;  %v1260_v63 = vadd.f32 %v1228_v13, %v1192_v22  ;;  %v3117_v22 = vld [vmem:[#allocation2 + $0x69] sm:$0xff] }
 0x1b7   : > { %4177 = vst [vmem:[#allocation22_spill] sm:$0xff] %v3063_v41  ;;  %v3076_v60 = vpop.f32.mrb[30].mxu0  ;;  %v1430_v14 = vadd.f32 %v1398_v12, %v1326_v57  ;;  %v1327_v1 = vadd.f32 %v1295_v35, %v1259_v45  ;;  %v1497_v5 = vadd.f32 %v1465_v27, %v1429_v25  ;;  %v1229_v18 = vmul.f32 %v2955_v2, %v3080_v50 }
 0x1b8   : > { %4178 = vst [vmem:[#allocation23_spill] sm:$0xff] %v3076_v60  ;;  %v3082_v51 = vpop.f32.mrb[31].mxu0  ;;  %v853_v60 = vmul.f32 0.16666667, %v821_v28  ;;  %v1193_v28 = vadd.f32 %v3016_v15, %v1089_v33  ;;  %v794_v62 = vmin.f32 %v762_v19, 6.0  ;;  %v760_v15 = vmax.f32 %v728_v29, 0.0 }
 0x1b9   : > { %4179 = vst [vmem:[#allocation24_spill] sm:$0xff] %v3082_v51  ;;  %v1296_v33 = vmul.f32 %v2957_v3, %v1124_v55  ;;  %v1125_v51 = vld [vmem:[#allocation2 + $0x90] sm:$0xff]  ;;  %v992_v38 = vmul.f32 %v2924_v26, %v3100_v49  ;;  %v3115_v12 = vadd.f32 %v2883_v24, %v2927_v31  ;;  %v1022_v27 = vadd.f32 %v990_v34, %v954_v20 }
 0x1ba   : > { %885 = vst.msk [vmem:[#allocation2 + $0xb0] sm:$0xff] %vm406_vm0, %v853_v60  ;;  %v763_v60 = vmax.f32 %v731_v52, 0.0  ;;  %v1261_v21 = vadd.f32 %v1229_v18, %v1193_v28  ;;  %v1058_v57 = vmul.f32 %v2938_v43, %v3100_v49  ;;  %v826_v45 = vmul.f32 %v794_v62, %v646_v32  ;;  %v3127_v52 = vld [vmem:[#allocation2 + $0xc7] sm:$0xff] }
 0x1bb   : > { %v3122_v25 = vadd.f32 %v3106_v7, %v1564_v10  ;;  %v1328_v6 = vadd.f32 %v1296_v33, %v1260_v63  ;;  %v1431_v13 = vadd.f32 %v1399_v0, %v1327_v1  ;;  %v1498_v35 = vadd.f32 %v3038_v56, %v1430_v14  ;;  %v1364_v33 = vld [vmem:[#allocation2 + $0x89] sm:$0xff] }
 0x1bc   : > { %v1565_v29 = vadd.f32 %v3045_v47, %v1497_v5  ;;  %v1297_v31 = vmul.f32 %v2957_v3, %v1125_v51  ;;  %v858_v34 = vmul.f32 0.16666667, %v826_v45  ;;  %v792_v20 = vmin.f32 %v760_v15, 6.0  ;;  %v3135_v47 = vld [vmem:[#allocation2 + $0x71] sm:$0xff] }
 0x1bd   : > { %4180 = vst [vmem:[#allocation25_spill] sm:$0xff] %v3122_v25  ;;  %v1534_v28 = vmul.f32 %v2983_v39, %v3117_v22  ;;  %v1024_v19 = vadd.f32 %v992_v38, %v956_v30  ;;  %v795_v32 = vmin.f32 %v763_v60, 6.0  ;;  %v729_v10 = vadd.f32 3.0, %v3115_v12 }
 0x1be   : > { %v1230_v63 = vmul.f32 %v2955_v2, %v1124_v55  ;;  %v1162_v56 = vmul.f32 %v2946_v54, %v3053_v37  ;;  %v1329_v0 = vadd.f32 %v1297_v31, %v1261_v21  ;;  %v1090_v14 = vadd.f32 %v1058_v57, %v1022_v27  ;;  %890 = vst.msk [vmem:[#allocation2 + $0x108] sm:$0xff] %vm406_vm0, %v858_v34  ;;  %v1126_v31 = vld [vmem:[#allocation2 + $0xa8] sm:$0xff] }
 0x1bf   : > { %v1635_v1 = vsel %vm406_vm0, %v3122_v25, 0.0  ;;  %v1499_v5 = vadd.f32 %v3041_v58, %v1431_v13  ;;  %v1566_v30 = vadd.f32 %v1534_v28, %v1498_v35  ;;  %v1060_v18 = vmul.f32 %v2938_v43, %v3127_v52 }
 0x1c0   : > { %v3144_v55 = vadd.f32 %v3106_v7, %v1565_v29  ;;  %v957_v37 = vmul.f32 %v2918_v23, %v3049_v61  ;;  %v1432_v62 = vadd.f32 %v3025_v36, %v1328_v6  ;;  %v824_v15 = vmul.f32 %v792_v20, %v3070_v16  ;;  %v1365_v16 = vld [vmem:[#allocation2 + $0x91] sm:$0xff] }
 0x1c1   : > { %v1535_v38 = vmul.f32 %v2983_v39, %v3135_v47  ;;  %v1092_v60 = vadd.f32 %v1060_v18, %v1024_v19  ;;  %v827_v58 = vmul.f32 %v795_v32, %v3074_v8  ;;  %v761_v27 = vmax.f32 %v729_v10, 0.0  ;;  %v3175_v28 = vld [vmem:[#allocation2 + $0xaf] sm:$0xff] }
 0x1c2   : > { %4181 = vst [vmem:[#allocation26_spill] sm:$0xff] %v3144_v55  ;;  %v991_v21 = vmul.f32 %v2924_v26, %v3049_v61  ;;  %v3156_v57 = vmul.f32 %v2946_v54, %v1125_v51  ;;  %v1433_v45 = vadd.f32 %v3030_v46, %v1329_v0  ;;  %v1194_v13 = vadd.f32 %v1162_v56, %v1090_v14 }
 0x1c3   : > { %v3160_v36 = vmul.f32 %v2955_v2, %v1125_v51  ;;  %v1468_v6 = vmul.f32 %v2978_v17, %v3117_v22  ;;  %v1567_v35 = vadd.f32 %v1535_v38, %v1499_v5  ;;  %v3165_v8 = vadd.f32 %v3106_v7, %v1566_v30  ;;  %v1128_v38 = vld [vmem:[#allocation2 + $0xc8] sm:$0xff] }
 0x1c4   : > { %v1636_v61 = vsel %vm406_vm0, %v3144_v55, 0.0  ;;  %v3170_v29 = vmul.f32 %v2965_v11, %v1364_v33  ;;  %v1469_v46 = vmul.f32 %v2978_v17, %v3135_v47  ;;  %v856_v51 = vmul.f32 0.16666667, %v824_v15 }
 0x1c5   : > { %4182 = vst [vmem:[#allocation27_spill] sm:$0xff] %v3165_v8  ;;  %v1500_v34 = vadd.f32 %v1468_v6, %v1432_v62  ;;  %v1196_v20 = vadd.f32 %v3095_v4, %v1092_v60  ;;  %v859_v19 = vmul.f32 0.16666667, %v827_v58  ;;  %v793_v32 = vmin.f32 %v761_v27, 6.0 }
 0x1c6   : > { %v3178_v10 = vmul.f32 %v2965_v11, %v1365_v16  ;;  %v1536_v56 = vmul.f32 %v2983_v39, %v1364_v33  ;;  %v1501_v0 = vadd.f32 %v1469_v46, %v1433_v45  ;;  %v1262_v14 = vadd.f32 %v1230_v63, %v1194_v13  ;;  %888 = vst.msk [vmem:[#allocation2 + $0xe8] sm:$0xff] %vm406_vm0, %v856_v51 }
 0x1c7   : > { %v955_v5 = vmul.f32 %v2918_v23, %v3005_v59  ;;  %v3185_v30 = vadd.f32 %v3106_v7, %v1567_v35  ;;  %v1638_v4 = vsel %vm406_vm0, %v3165_v8, 0.0  ;;  %v1232_v18 = vmul.f32 %v2955_v2, %v1126_v31  ;;  %891 = vst.msk [vmem:[#allocation2 + $0x110] sm:$0xff] %vm406_vm0, %v859_v19  ;;  %v921_v19 = vld [vmem:[#allocation2 + $0xcf] sm:$0xff] }
 0x1c8   : > { %v1637_v62 = vadd.f32 %v1636_v61, %v1635_v1  ;;  %v1537_v15 = vmul.f32 %v2983_v39, %v1365_v16  ;;  %v1298_v63 = vmul.f32 %v2957_v3, %v1126_v31  ;;  %v993_v60 = vmul.f32 %v2924_v26, %v3175_v28 }
 0x1c9   : > { %4183 = vst [vmem:[#allocation28_spill] sm:$0xff] %v3185_v30  ;;  %v1568_v59 = vadd.f32 %v1536_v56, %v1500_v34  ;;  %v1264_v58 = vadd.f32 %v1232_v18, %v1196_v20  ;;  %v1059_v27 = vmul.f32 %v2938_v43, %v3175_v28  ;;  %v825_v45 = vmul.f32 %v793_v32, %v3115_v12 }
 0x1ca   : > { %v1470_v13 = vmul.f32 %v2978_v17, %v1364_v33  ;;  %v1569_v6 = vadd.f32 %v1537_v15, %v1501_v0  ;;  %v1639_v35 = vadd.f32 %v1638_v4, %v1637_v62  ;;  %v1330_v1 = vadd.f32 %v1298_v63, %v1262_v14  ;;  %v1129_v15 = vld [vmem:[#allocation2 + $0xd0] sm:$0xff] }
 0x1cb   : > { %v1023_v61 = vadd.f32 %v991_v21, %v955_v5  ;;  %v1640_v46 = vsel %vm406_vm0, %v3185_v30, 0.0  ;;  %v1300_v51 = vmul.f32 %v2957_v3, %v1128_v38  ;;  %v857_v8 = vmul.f32 0.16666667, %v825_v45 }
 0x1cc   : > { %v1402_v34 = vmul.f32 %v2965_v11, %v3117_v22  ;;  %v994_v20 = vmul.f32 %v2924_v26, %v3127_v52  ;;  %v1025_v12 = vadd.f32 %v993_v60, %v957_v37  ;;  %v3208_v33 = vadd.f32 %v2935_v42, %v2883_v24 }
 0x1cd   : > { %v3211_v21 = vadd.f32 %v3106_v7, %v1568_v59  ;;  %v958_v32 = vmul.f32 %v2918_v23, %v3100_v49  ;;  %v1332_v56 = vadd.f32 %v1300_v51, %v1264_v58  ;;  %v1091_v0 = vadd.f32 %v1059_v27, %v1023_v61  ;;  %889 = vst.msk [vmem:[#allocation2 + $0xf0] sm:$0xff] %vm406_vm0, %v857_v8  ;;  %v1368_v59 = vld [vmem:[#allocation2 + $0xc9] sm:$0xff] }
 0x1ce   : > { %v3217_v22 = vadd.f32 %v3106_v7, %v1569_v6  ;;  %v1641_v14 = vadd.f32 %v1640_v46, %v1639_v35  ;;  %v1434_v5 = vadd.f32 %v1402_v34, %v1330_v1  ;;  %v1061_v37 = vmul.f32 %v2938_v43, %v921_v19  ;;  %v3248_v35 = vld [vmem:[#allocation2 + $0xe7] sm:$0xff]  ;;  %v1127_v51 = vld [vmem:[#allocation2 + $0xb0] sm:$0xff] }
 0x1cf   : > { %4184 = vst [vmem:[#allocation29_spill] sm:$0xff] %v3211_v21  ;;  %v3221_v42 = vmul.f32 %v2978_v17, %v1365_v16  ;;  %v1163_v4 = vmul.f32 %v2946_v54, %v3080_v50  ;;  %v3227_v49 = vmul.f32 %v2965_v11, %v3135_v47  ;;  %v960_v8 = vmul.f32 %v2918_v23, %v3127_v52 }
 0x1d0   : > { %4185 = vst [vmem:[#allocation30_spill] sm:$0xff] %v3217_v22  ;;  %v3232_v18 = vmul.f32 %v2946_v54, %v1128_v38  ;;  %v3235_v62 = vmul.f32 %v2955_v2, %v1128_v38  ;;  %v1093_v63 = vadd.f32 %v1061_v37, %v1025_v12  ;;  %v734_v16 = vadd.f32 3.0, %v3208_v33  ;;  %v1369_v38 = vld [vmem:[#allocation2 + $0xd1] sm:$0xff] }
 0x1d1   : > { %v1642_v50 = vsel %vm406_vm0, %v3211_v21, 0.0  ;;  %v1026_v60 = vadd.f32 %v994_v20, %v958_v32  ;;  %v1166_v47 = vmul.f32 %v2946_v54, %v1126_v31  ;;  %v1195_v58 = vadd.f32 %v1163_v4, %v1091_v0 }
 0x1d2   : > { %v3241_v27 = vadd.f32 %v1642_v50, %v1641_v14  ;;  %v3245_v52 = vsel %vm406_vm0, %v3217_v22, 0.0  ;;  %v1436_v45 = vadd.f32 %v3170_v29, %v1332_v56  ;;  %v1502_v6 = vadd.f32 %v1470_v13, %v1434_v5  ;;  %v1366_v5 = vld [vmem:[#allocation2 + $0xa9] sm:$0xff]  ;;  %v3292_v50 = vld [vmem:[#allocation2 + $0xb1] sm:$0xff] }
 0x1d3   : > { %v3251_v1 = vmul.f32 %v2918_v23, %v921_v19  ;;  %v995_v61 = vmul.f32 %v2924_v26, %v921_v19  ;;  %v3255_v31 = vmul.f32 %v2946_v54, %v1129_v15  ;;  %v3258_v46 = vmul.f32 %v2955_v2, %v1129_v15 }
 0x1d4   : > { %v1301_v34 = vmul.f32 %v2957_v3, %v1129_v15  ;;  %v3262_v20 = vmul.f32 %v2965_v11, %v1368_v59  ;;  %v1197_v29 = vadd.f32 %v3156_v57, %v1093_v63  ;;  %v766_v13 = vmax.f32 %v734_v16, 0.0 }
 0x1d5   : > { %v3266_v12 = vmul.f32 %v2965_v11, %v1369_v38  ;;  %v1263_v19 = vadd.f32 %v3160_v36, %v1195_v58  ;;  %v996_v32 = vmul.f32 %v2924_v26, %v3248_v35  ;;  %v654_v56 = vadd.f32 %v2883_v24, %v2940_v44  ;;  %v3294_v58 = vld [vmem:[#allocation2 + $0x107] sm:$0xff] }
 0x1d6   : > { %v959_v0 = vmul.f32 %v2918_v23, %v3175_v28  ;;  %v1233_v14 = vmul.f32 %v2955_v2, %v1127_v51  ;;  %v1062_v57 = vmul.f32 %v2938_v43, %v3248_v35  ;;  %v665_v37 = vadd.f32 %v2942_v48, %v2883_v24  ;;  %v3296_v48 = vld [vmem:[#allocation2 + $0xef] sm:$0xff] }
 0x1d7   : > { %4186 = vst [vmem:[#allocation31_spill] sm:$0xff] %v3266_v12  ;;  %v3281_v36 = vmul.f32 %v2978_v17, %v1368_v59  ;;  %v3284_v4 = vmul.f32 %v2978_v17, %v1369_v38  ;;  %v1540_v44 = vmul.f32 %v2983_v39, %v1368_v59  ;;  %v1299_v15 = vmul.f32 %v2957_v3, %v1127_v51 }
 0x1d8   : > { %v3289_v28 = vmul.f32 %v2983_v39, %v1369_v38  ;;  %v1167_v63 = vmul.f32 %v2946_v54, %v1127_v51  ;;  %v1265_v16 = vadd.f32 %v1233_v14, %v1197_v29  ;;  %v798_v22 = vmin.f32 %v766_v13, 6.0 }
 0x1d9   : > { %4187 = vst [vmem:[#allocation32_spill] sm:$0xff] %v3281_v36  ;;  %4188 = vst [vmem:[#allocation33_spill] sm:$0xff] %v3284_v4  ;;  %v1331_v21 = vadd.f32 %v1299_v15, %v1263_v19  ;;  %v3299_v30 = vmul.f32 %v2965_v11, %v1366_v5  ;;  %v1028_v59 = vadd.f32 %v996_v32, %v960_v8  ;;  %v732_v55 = vadd.f32 3.0, %v654_v56 }
 0x1da   : > { %v1027_v25 = vadd.f32 %v995_v61, %v959_v0  ;;  %v1094_v41 = vadd.f32 %v1062_v57, %v1026_v60  ;;  %v735_v38 = vadd.f32 3.0, %v665_v37  ;;  %v657_v51 = vadd.f32 %v2883_v24, %v2944_v53 }
 0x1db   : > { %v1472_v29 = vmul.f32 %v2978_v17, %v1366_v5  ;;  %v1473_v14 = vmul.f32 %v2978_v17, %v3292_v50  ;;  %v1064_v13 = vmul.f32 %v2938_v43, %v3294_v58  ;;  %v1063_v19 = vmul.f32 %v2938_v43, %v3296_v48 }
 0x1dc   : > { %v1333_v15 = vadd.f32 %v1301_v34, %v1265_v16  ;;  %v1538_v8 = vmul.f32 %v2983_v39, %v1366_v5  ;;  %v830_v60 = vmul.f32 %v798_v22, %v3208_v33  ;;  %v678_v61 = vadd.f32 %v2963_v9, %v2883_v24  ;;  %v3317_v16 = vld [vmem:[#allocation2 + $0xe8] sm:$0xff] }
 0x1dd   : > { %v1435_v53 = vadd.f32 %v3227_v49, %v1331_v21  ;;  %v1096_v32 = vadd.f32 %v1064_v13, %v1028_v59  ;;  %v997_v0 = vmul.f32 %v2924_v26, %v3296_v48  ;;  %v764_v57 = vmax.f32 %v732_v55, 0.0  ;;  %v3320_v9 = vld [vmem:[#allocation2 + $0x10f] sm:$0xff] }
 0x1de   : > { %v1198_v40 = vadd.f32 %v1166_v47, %v1094_v41  ;;  %v862_v12 = vmul.f32 0.16666667, %v830_v60  ;;  %v767_v4 = vmax.f32 %v735_v38, 0.0  ;;  %v733_v17 = vadd.f32 3.0, %v657_v51  ;;  %v3339_v60 = vld [vmem:[#allocation2 + $0xf0] sm:$0xff] }
 0x1df   : > { %v1504_v36 = vadd.f32 %v1472_v29, %v1436_v45  ;;  %v1570_v34 = vadd.f32 %v1538_v8, %v1502_v6  ;;  %v1095_v5 = vadd.f32 %v1063_v19, %v1027_v25  ;;  %v796_v33 = vmin.f32 %v764_v57, 6.0 }
 0x1e0   : > { %v1437_v22 = vadd.f32 %v3178_v10, %v1333_v15  ;;  %894 = vst.msk [vmem:[#allocation2 + $0x148] sm:$0xff] %vm406_vm0, %v862_v12  ;;  %v799_v21 = vmin.f32 %v767_v4, 6.0  ;;  %v765_v49 = vmax.f32 %v733_v17, 0.0  ;;  %v738_v59 = vadd.f32 3.0, %v678_v61 }
 0x1e1   : > { %v1503_v41 = vadd.f32 %v3221_v42, %v1435_v53  ;;  %v1200_v55 = vadd.f32 %v3232_v18, %v1096_v32  ;;  %v1029_v47 = vadd.f32 %v997_v0, %v3251_v1  ;;  %v828_v45 = vmul.f32 %v796_v33, %v654_v56  ;;  %v1132_v18 = vld [vmem:[#allocation2 + $0x108] sm:$0xff] }
 0x1e2   : > { %v1236_v25 = vmul.f32 %v2955_v2, %v3317_v16  ;;  %v1266_v6 = vadd.f32 %v3235_v62, %v1198_v40  ;;  %v831_v10 = vmul.f32 %v799_v21, %v665_v37  ;;  %v797_v38 = vmin.f32 %v765_v49, 6.0 }
 0x1e3   : > { %v1065_v12 = vmul.f32 %v2938_v43, %v3320_v9  ;;  %v1199_v4 = vadd.f32 %v1167_v63, %v1095_v5  ;;  %v860_v17 = vmul.f32 0.16666667, %v828_v45  ;;  %v770_v29 = vmax.f32 %v738_v59, 0.0  ;;  %v4190_v5 = vld [vmem:[#allocation12_spill] sm:$0xff]  ;;  %v1133_v45 = vld [vmem:[#allocation2 + $0x110] sm:$0xff] }
 0x1e4   : > { %v1539_v42 = vmul.f32 %v2983_v39, %v3292_v50  ;;  %v1302_v1 = vmul.f32 %v2957_v3, %v3317_v16  ;;  %v863_v56 = vmul.f32 0.16666667, %v831_v10  ;;  %v829_v13 = vmul.f32 %v797_v38, %v657_v51 }
 0x1e5   : > { %v1572_v19 = vadd.f32 %v1540_v44, %v1504_v36  ;;  %v1268_v15 = vadd.f32 %v1236_v25, %v1200_v55  ;;  %v1097_v40 = vadd.f32 %v1065_v12, %v1029_v47  ;;  %892 = vst.msk [vmem:[#allocation2 + $0x128] sm:$0xff] %vm406_vm0, %v860_v17  ;;  %v802_v62 = vmin.f32 %v770_v29, 6.0  ;;  %v3380_v25 = vld [vmem:[#allocation2 + $0xe9] sm:$0xff] }
 0x1e6   : > { %v1571_v37 = vadd.f32 %v1539_v42, %v1503_v41  ;;  %v3337_v63 = vadd.f32 %v3106_v7, %v1570_v34  ;;  %v1334_v8 = vadd.f32 %v1302_v1, %v1266_v6  ;;  %895 = vst.msk [vmem:[#allocation2 + $0x150] sm:$0xff] %vm406_vm0, %v863_v56  ;;  %v861_v53 = vmul.f32 0.16666667, %v829_v13  ;;  %v4194_v42 = vld [vmem:[#allocation32_spill] sm:$0xff] }
 0x1e7   : > { %v1505_v32 = vadd.f32 %v1473_v14, %v1437_v22  ;;  %v1304_v0 = vmul.f32 %v2957_v3, %v1132_v18  ;;  %v1267_v36 = vadd.f32 %v3258_v46, %v1199_v4  ;;  %v834_v44 = vmul.f32 %v802_v62, %v678_v61 }
 0x1e8   : > { %4189 = vst [vmem:[#allocation34_spill] sm:$0xff] %v3337_v63  ;;  %v1407_v51 = vmul.f32 %v2965_v11, %v3292_v50  ;;  %v1645_v57 = vadd.f32 %v3245_v52, %v3241_v27  ;;  %v3350_v34 = vmul.f32 %v2918_v23, %v3294_v58  ;;  %893 = vst.msk [vmem:[#allocation2 + $0x130] sm:$0xff] %vm406_vm0, %v861_v53  ;;  %v1646_v52 = vsel %vm406_vm0, %v3337_v63, 0.0  ;;  %v4213_v63 = vld [vmem:[#allocation23_spill] sm:$0xff] }
 0x1e9   : > { %v3355_v14 = vadd.f32 %v2883_v24, %v4190_v5  ;;  %v3358_v33 = vadd.f32 %v3106_v7, %v1572_v19  ;;  %v1336_v46 = vadd.f32 %v1304_v0, %v1268_v15  ;;  %v1201_v61 = vadd.f32 %v3255_v31, %v1097_v40  ;;  %v1372_v19 = vld [vmem:[#allocation2 + $0x109] sm:$0xff] }
 0x1ea   : > { %v1303_v50 = vmul.f32 %v2957_v3, %v3339_v60  ;;  %v3364_v27 = vadd.f32 %v3106_v7, %v1571_v37  ;;  %v1438_v22 = vadd.f32 %v3299_v30, %v1334_v8  ;;  %v866_v21 = vmul.f32 0.16666667, %v834_v44 }
 0x1eb   : > { %4191 = vst [vmem:[#allocation12_spill] sm:$0xff] %v3358_v33  ;;  %v1573_v49 = vadd.f32 %v3289_v28, %v1505_v32  ;;  %v998_v59 = vmul.f32 %v2924_v26, %v3294_v58  ;;  %v1237_v31 = vmul.f32 %v2955_v2, %v3339_v60  ;;  %v3375_v55 = vmul.f32 %v2946_v54, %v1132_v18  ;;  %v4193_v28 = vld [vmem:[#allocation14_spill] sm:$0xff] }
 0x1ec   : > { %4192 = vst [vmem:[#allocation35_spill] sm:$0xff] %v3364_v27  ;;  %v1335_v41 = vadd.f32 %v1303_v50, %v1267_v36  ;;  %v3378_v47 = vmul.f32 %v2955_v2, %v1132_v18  ;;  %898 = vst.msk [vmem:[#allocation2 + $0x188] sm:$0xff] %vm406_vm0, %v866_v21  ;;  %v736_v30 = vadd.f32 3.0, %v3355_v14  ;;  %v3386_v58 = vadd.f32 %v4193_v28, %v2883_v24  ;;  %v4200_v28 = vld [vmem:[#allocation31_spill] sm:$0xff] }
 0x1ed   : > { %v1647_v6 = vadd.f32 %v1646_v52, %v1645_v57  ;;  %v962_v10 = vmul.f32 %v2918_v23, %v3248_v35  ;;  %v1269_v38 = vadd.f32 %v1237_v31, %v1201_v61  ;;  %v1440_v12 = vadd.f32 %v3262_v20, %v1336_v46  ;;  %v4196_v20 = vld [vmem:[#allocation13_spill] sm:$0xff] }
 0x1ee   : > { %v1648_v4 = vsel %vm406_vm0, %v3364_v27, 0.0  ;;  %v1650_v17 = vsel %vm406_vm0, %v3358_v33, 0.0  ;;  %v3397_v29 = vmul.f32 %v2946_v54, %v3317_v16  ;;  %v1506_v18 = vadd.f32 %v4194_v42, %v1438_v22  ;;  %v4197_v16 = vld [vmem:[#allocation16_spill] sm:$0xff]  ;;  %v1371_v57 = vld [vmem:[#allocation2 + $0xf1] sm:$0xff] }
 0x1ef   : > { %v3401_v1 = vadd.f32 %v3106_v7, %v1573_v49  ;;  %v1305_v35 = vmul.f32 %v2957_v3, %v1133_v45  ;;  %v1439_v56 = vadd.f32 %v1407_v51, %v1335_v41  ;;  %v1476_v13 = vmul.f32 %v4196_v20, %v3380_v25  ;;  %v1373_v61 = vld [vmem:[#allocation2 + $0x111] sm:$0xff] }
 0x1f0   : > { %v1542_v15 = vmul.f32 %v2983_v39, %v3380_v25  ;;  %v768_v40 = vmax.f32 %v736_v30, 0.0  ;;  %v739_v62 = vadd.f32 3.0, %v3386_v58  ;;  %v673_v37 = vadd.f32 %v2883_v24, %v4197_v16  ;;  %v4198_v52 = vld [vmem:[#allocation33_spill] sm:$0xff] }
 0x1f1   : > { %4195 = vst [vmem:[#allocation14_spill] sm:$0xff] %v3401_v1  ;;  %v1649_v8 = vadd.f32 %v1648_v4, %v1647_v6  ;;  %v3411_v53 = vadd.f32 %v998_v59, %v962_v10  ;;  %v1337_v32 = vadd.f32 %v1305_v35, %v1269_v38  ;;  %v1508_v0 = vadd.f32 %v1476_v13, %v1440_v12  ;;  %v4199_v31 = vld [vmem:[#allocation17_spill] sm:$0xff]  ;;  %v3456_v13 = vld [vmem:[#allocation2 + $0x127] sm:$0xff] }
 0x1f2   : > { %v3415_v36 = vmul.f32 %v2918_v23, %v3320_v9  ;;  %v999_v44 = vmul.f32 %v2924_v26, %v3320_v9  ;;  %v3420_v51 = vmul.f32 %v2946_v54, %v1133_v45  ;;  %v1574_v5 = vadd.f32 %v1542_v15, %v1506_v18  ;;  %v3432_v9 = vld [vmem:[%s4122_s2] ss:$0 sm:$0xff] }
 0x1f3   : > { %v1652_v24 = vsel %vm406_vm0, %v3401_v1, 0.0  ;;  %v3425_v46 = vmul.f32 %v2955_v2, %v1133_v45  ;;  %v1544_v50 = vmul.f32 %v2983_v39, %v1372_v19  ;;  %v1507_v22 = vadd.f32 %v4198_v52, %v1439_v56  ;;  %v4203_v52 = vld [vmem:[#allocation18_spill] sm:$0xff] }
 0x1f4   : > { %v800_v21 = vmin.f32 %v768_v40, 6.0  ;;  %v771_v49 = vmax.f32 %v739_v62, 0.0  ;;  %v737_v59 = vadd.f32 3.0, %v673_v37  ;;  %v694_v41 = vadd.f32 %v3432_v9, %v4199_v31 }
 0x1f5   : > { %v1651_v30 = vadd.f32 %v1650_v17, %v1649_v8  ;;  %v1441_v45 = vadd.f32 %v4200_v28, %v1337_v32  ;;  %v1543_v6 = vmul.f32 %v2983_v39, %v1371_v57  ;;  %v1576_v10 = vadd.f32 %v1544_v50, %v1508_v0 }
 0x1f6   : > { %v3439_v38 = vmul.f32 %v2965_v11, %v1372_v19  ;;  %v3442_v12 = vmul.f32 %v2965_v11, %v1373_v61  ;;  %v963_v4 = vmul.f32 %v2918_v23, %v3296_v48  ;;  %v3447_v42 = vadd.f32 %v3106_v7, %v1574_v5 }
 0x1f7   : > { %v3450_v18 = vmul.f32 %v4196_v20, %v1372_v19  ;;  %v3453_v17 = vmul.f32 %v4196_v20, %v1373_v61  ;;  %v1477_v35 = vmul.f32 %v4196_v20, %v1371_v57  ;;  %v1575_v56 = vadd.f32 %v1543_v6, %v1507_v22  ;;  %v928_v6 = vld [vmem:[#allocation2 + $0x147] sm:$0xff] }
 0x1f8   : > { %4201 = vst [vmem:[#allocation32_spill] sm:$0xff] %v3447_v42  ;;  %v832_v15 = vmul.f32 %v800_v21, %v3355_v14  ;;  %v803_v40 = vmin.f32 %v771_v49, 6.0  ;;  %v769_v62 = vmax.f32 %v737_v59, 0.0  ;;  %v742_v16 = vadd.f32 3.0, %v694_v41 }
 0x1f9   : > { %v1545_v48 = vmul.f32 %v2983_v39, %v1373_v61  ;;  %v1509_v8 = vadd.f32 %v1477_v35, %v1441_v45  ;;  %v3461_v32 = vadd.f32 %v3106_v7, %v1576_v10  ;;  %v1653_v19 = vadd.f32 %v1652_v24, %v1651_v30  ;;  %v3488_v45 = vld [vmem:[#allocation2 + $0x12f] sm:$0xff] }
 0x1fa   : > { %v1031_v0 = vadd.f32 %v999_v44, %v963_v4  ;;  %v3465_v5 = vmul.f32 %v2946_v54, %v3339_v60  ;;  %v1654_v50 = vsel %vm406_vm0, %v3447_v42, 0.0  ;;  %v686_v14 = vadd.f32 %v3432_v9, %v4203_v52  ;;  %v1374_v42 = vld [vmem:[#allocation2 + $0x129] sm:$0xff] }
 0x1fb   : > { %4202 = vst [vmem:[#allocation13_spill] sm:$0xff] %v3461_v32  ;;  %v3473_v22 = vmul.f32 %v2965_v11, %v3380_v25  ;;  %v3476_v61 = vadd.f32 %v3106_v7, %v1575_v56  ;;  %v1000_v44 = vmul.f32 %v2924_v26, %v3456_v13  ;;  %v1066_v60 = vmul.f32 %v2938_v43, %v3456_v13 }
 0x1fc   : > { %v864_v24 = vmul.f32 0.16666667, %v832_v15  ;;  %v835_v21 = vmul.f32 %v803_v40, %v3386_v58  ;;  %v801_v49 = vmin.f32 %v769_v62, 6.0  ;;  %v774_v59 = vmax.f32 %v742_v16, 0.0  ;;  %v4205_v40 = vld [vmem:[#allocation19_spill] sm:$0xff]  ;;  %v1136_v16 = vld [vmem:[#allocation2 + $0x148] sm:$0xff] }
 0x1fd   : > { %4204 = vst [vmem:[#allocation16_spill] sm:$0xff] %v3476_v61  ;;  %v3484_v31 = vmul.f32 %v2965_v11, %v1371_v57  ;;  %v1577_v30 = vadd.f32 %v1545_v48, %v1509_v8  ;;  %v1655_v25 = vadd.f32 %v1654_v50, %v1653_v19  ;;  %v1658_v28 = vsel %vm406_vm0, %v3461_v32, 0.0 }
 0x1fe   : > { %896 = vst.msk [vmem:[#allocation2 + $0x168] sm:$0xff] %vm406_vm0, %v864_v24  ;;  %v867_v10 = vmul.f32 0.16666667, %v835_v21  ;;  %v833_v4 = vmul.f32 %v801_v49, %v673_v37  ;;  %v806_v35 = vmin.f32 %v774_v59, 6.0  ;;  %v740_v56 = vadd.f32 3.0, %v686_v14 }
 0x1ff   : > { %v1656_v58 = vsel %vm406_vm0, %v3476_v61, 0.0  ;;  %v1032_v57 = vadd.f32 %v1000_v44, %v3350_v34  ;;  %v1098_v15 = vadd.f32 %v1066_v60, %v3411_v53  ;;  %v3497_v62 = vadd.f32 %v3432_v9, %v4205_v40 }
 0x200   : > { %v1001_v48 = vmul.f32 %v2924_v26, %v3488_v45  ;;  %899 = vst.msk [vmem:[#allocation2 + $0x190] sm:$0xff] %vm406_vm0, %v867_v10  ;;  %v865_v37 = vmul.f32 0.16666667, %v833_v4  ;;  %v838_v8 = vmul.f32 %v806_v35, %v694_v41  ;;  %v772_v19 = vmax.f32 %v740_v56, 0.0  ;;  %v929_v10 = vld [vmem:[#allocation2 + $0x14f] sm:$0xff] }
 0x201   : > { %v3503_v50 = vadd.f32 %v3106_v7, %v1577_v30  ;;  %v3506_v34 = vmul.f32 %v2918_v23, %v928_v6  ;;  %v1068_v53 = vmul.f32 %v2938_v43, %v928_v6  ;;  %v1067_v52 = vmul.f32 %v2938_v43, %v3488_v45  ;;  %v1134_v30 = vld [vmem:[#allocation2 + $0x128] sm:$0xff] }
 0x202   : > { %v1657_v44 = vadd.f32 %v1656_v58, %v1655_v25  ;;  %v1002_v60 = vmul.f32 %v2924_v26, %v928_v6  ;;  %897 = vst.msk [vmem:[#allocation2 + $0x170] sm:$0xff] %vm406_vm0, %v865_v37  ;;  %v870_v24 = vmul.f32 0.16666667, %v838_v8  ;;  %v804_v21 = vmin.f32 %v772_v19, 6.0  ;;  %v4207_v56 = vld [vmem:[#allocation20_spill] sm:$0xff] }
 0x203   : > { %4206 = vst [vmem:[#allocation33_spill] sm:$0xff] %v3503_v50  ;;  %v3514_v41 = vmul.f32 %v2946_v54, %v1136_v16  ;;  %v3517_v49 = vmul.f32 %v2955_v2, %v1136_v16  ;;  %v1100_v59 = vadd.f32 %v1068_v53, %v1032_v57  ;;  %v743_v4 = vadd.f32 3.0, %v3497_v62  ;;  %v1137_v53 = vld [vmem:[#allocation2 + $0x150] sm:$0xff] }
 0x204   : > { %v1202_v35 = vadd.f32 %v3397_v29, %v1098_v15  ;;  %v1033_v25 = vadd.f32 %v1001_v48, %v3415_v36  ;;  %902 = vst.msk [vmem:[#allocation2 + $0x1c8] sm:$0xff] %vm406_vm0, %v870_v24  ;;  %v836_v6 = vmul.f32 %v804_v21, %v686_v14  ;;  %v3525_v58 = vadd.f32 %v3432_v9, %v4207_v56  ;;  %v4210_v21 = vld [vmem:[#allocation21_spill] sm:$0xff] }
 0x205   : > { %v3529_v40 = vsel %vm406_vm0, %v3503_v50, 0.0  ;;  %v1308_v57 = vmul.f32 %v2957_v3, %v1136_v16  ;;  %v1099_v37 = vadd.f32 %v1067_v52, %v1031_v0  ;;  %v3532_v8 = vadd.f32 %v1658_v28, %v1657_v44  ;;  %v1376_v52 = vld [vmem:[#allocation2 + $0x149] sm:$0xff]  ;;  %v1377_v44 = vld [vmem:[#allocation2 + $0x151] sm:$0xff] }
 0x206   : > { %4208 = vst [vmem:[#allocation17_spill] sm:$0xff] %v3529_v40  ;;  %v966_v29 = vmul.f32 %v2918_v23, %v3456_v13  ;;  %v3537_v36 = vmul.f32 %v2946_v54, %v1134_v30  ;;  %v1069_v14 = vmul.f32 %v2938_v43, %v929_v10  ;;  %v4145_v15 = vmov 0.0|0.0   ;;  %v4214_v40 = vld [vmem:[#allocation24_spill] sm:$0xff] }
 0x207   : > { %4209 = vst [vmem:[#allocation31_spill] sm:$0xff] %v3532_v8  ;;  %2415 = vmatprep.subr.bf16.mxu1 %v4145_v15  ;;  %v1204_v48 = vadd.f32 %v3375_v55, %v1100_v59  ;;  %v1240_v19 = vmul.f32 %v2955_v2, %v1134_v30  ;;  %v868_v16 = vmul.f32 0.16666667, %v836_v6  ;;  %v775_v0 = vmax.f32 %v743_v4, 0.0 }
 0x208   : > { %v1270_v28 = vadd.f32 %v3378_v47, %v1202_v35  ;;  %v1101_v13 = vadd.f32 %v1069_v14, %v1033_v25  ;;  %v741_v24 = vadd.f32 3.0, %v3525_v58  ;;  %v3547_v56 = vadd.f32 %v3432_v9, %v4210_v21 }
 0x209   : > { %v1306_v15 = vmul.f32 %v2957_v3, %v1134_v30  ;;  %v3551_v55 = vmul.f32 %v2918_v23, %v929_v10  ;;  %v1003_v59 = vmul.f32 %v2924_v26, %v929_v10  ;;  %v1203_v4 = vadd.f32 %v3465_v5, %v1099_v37  ;;  %900 = vst.msk [vmem:[#allocation2 + $0x1a8] sm:$0xff] %vm406_vm0, %v868_v16  ;;  %v1135_v10 = vld [vmem:[#allocation2 + $0x130] sm:$0xff] }
 0x20a   : > { %v1034_v47 = vadd.f32 %v1002_v60, %v966_v29  ;;  %v3557_v35 = vmul.f32 %v2946_v54, %v1137_v53  ;;  %v3560_v25 = vmul.f32 %v2955_v2, %v1137_v53  ;;  %v1309_v6 = vmul.f32 %v2957_v3, %v1137_v53  ;;  %v3570_v29 = vld [vmem:[#allocation2 + $0x167] sm:$0xff]  ;;  %v4212_v53 = vld [vmem:[#allocation22_spill] sm:$0xff] }
 0x20b   : > { %v1272_v14 = vadd.f32 %v1240_v19, %v1204_v48  ;;  %v3564_v30 = vmul.f32 %v2965_v11, %v1376_v52  ;;  %v3567_v21 = vmul.f32 %v2965_v11, %v1377_v44  ;;  %v807_v5 = vmin.f32 %v775_v0, 6.0 }
 0x20c   : > { %v1338_v37 = vadd.f32 %v1306_v15, %v1270_v28  ;;  %v1205_v60 = vadd.f32 %v3420_v51, %v1101_v13  ;;  %v773_v16 = vmax.f32 %v741_v24, 0.0  ;;  %v746_v50 = vadd.f32 3.0, %v3547_v56 }
 0x20d   : > { %4211 = vst [vmem:[#allocation18_spill] sm:$0xff] %v3567_v21  ;;  %v3574_v32 = vmul.f32 %v4196_v20, %v1376_v52  ;;  %v3577_v48 = vmul.f32 %v4196_v20, %v1377_v44  ;;  %v1271_v19 = vadd.f32 %v3425_v46, %v1203_v4  ;;  %v702_v61 = vadd.f32 %v3432_v9, %v4212_v53 }
 0x20e   : > { %v3583_v15 = vmul.f32 %v2983_v39, %v1376_v52  ;;  %v3586_v51 = vmul.f32 %v2983_v39, %v1377_v44  ;;  %v967_v0 = vmul.f32 %v2918_v23, %v3488_v45  ;;  %v1241_v28 = vmul.f32 %v2955_v2, %v1135_v10 }
 0x20f   : > { %v1340_v13 = vadd.f32 %v1308_v57, %v1272_v14  ;;  %v1307_v24 = vmul.f32 %v2957_v3, %v1135_v10  ;;  %v1070_v46 = vmul.f32 %v2938_v43, %v3570_v29  ;;  %v839_v4 = vmul.f32 %v807_v5, %v3497_v62 }
 0x210   : > { %v1442_v52 = vadd.f32 %v3473_v22, %v1338_v37  ;;  %v1273_v53 = vadd.f32 %v1241_v28, %v1205_v60  ;;  %v805_v1 = vmin.f32 %v773_v16, 6.0  ;;  %v778_v44 = vmax.f32 %v746_v50, 0.0  ;;  %v3618_v16 = vld [vmem:[#allocation2 + $0x16f] sm:$0xff] }
 0x211   : > { %v1339_v33 = vadd.f32 %v1307_v24, %v1271_v19  ;;  %v744_v27 = vadd.f32 3.0, %v702_v61  ;;  %v713_v45 = vadd.f32 %v3432_v9, %v4213_v63  ;;  %v705_v57 = vadd.f32 %v3432_v9, %v4214_v40  ;;  %v1705_v63 = vld [vmem:[%s4125_s5] sm:$0xff]  ;;  %v1706_v9 = vld [vmem:[%s4125_s5 + $0x8] sm:$0xff] }
 0x212   : > { %v1035_v14 = vadd.f32 %v1003_v59, %v967_v0  ;;  %v3601_v8 = vmul.f32 %v2946_v54, %v1135_v10  ;;  %v3604_v21 = vmul.f32 %v2965_v11, %v1374_v42  ;;  %v1480_v22 = vmul.f32 %v4196_v20, %v1374_v42  ;;  %v1707_v0 = vld [vmem:[%s4125_s5 + $0x10] sm:$0xff] }
 0x213   : > { %v1444_v62 = vadd.f32 %v3439_v38, %v1340_v13  ;;  %v1546_v50 = vmul.f32 %v2983_v39, %v1374_v42  ;;  %v1102_v5 = vadd.f32 %v1070_v46, %v1034_v47  ;;  %v871_v37 = vmul.f32 0.16666667, %v839_v4 }
 0x214   : > { %v1341_v40 = vadd.f32 %v1309_v6, %v1273_v53  ;;  %v1510_v59 = vadd.f32 %v3450_v18, %v1442_v52  ;;  %v837_v10 = vmul.f32 %v805_v1, %v3525_v58  ;;  %v810_v60 = vmin.f32 %v778_v44, 6.0  ;;  %v1708_v18 = vld [vmem:[%s4125_s5 + $0x18] sm:$0xff]  ;;  %v932_v44 = vld [vmem:[#allocation2 + $0x187] sm:$0xff] }
 0x215   : > { %v1443_v38 = vadd.f32 %v3484_v31, %v1339_v33  ;;  %903 = vst.msk [vmem:[#allocation2 + $0x1d0] sm:$0xff] %vm406_vm0, %v871_v37  ;;  %v776_v42 = vmax.f32 %v744_v27, 0.0  ;;  %v747_v47 = vadd.f32 3.0, %v713_v45  ;;  %v745_v19 = vadd.f32 3.0, %v705_v57  ;;  %v1375_v6 = vld [vmem:[#allocation2 + $0x131] sm:$0xff] }
 0x216   : > { %v1004_v1 = vmul.f32 %v2924_v26, %v3570_v29  ;;  %v869_v58 = vmul.f32 0.16666667, %v837_v10  ;;  %v842_v33 = vmul.f32 %v810_v60, %v3547_v56  ;;  %v2416_v31 = vpack.c.bf16 %v1706_v9, %v1705_v63 }
 0x217   : > { %v1206_v27 = vadd.f32 %v3537_v36, %v1102_v5  ;;  %v808_v28 = vmin.f32 %v776_v42, 6.0  ;;  %v779_v13 = vmax.f32 %v747_v47, 0.0  ;;  %v777_v24 = vmax.f32 %v745_v19, 0.0 }
 0x218   : > { %v1071_v46 = vmul.f32 %v2938_v43, %v3618_v16  ;;  %901 = vst.msk [vmem:[#allocation2 + $0x1b0] sm:$0xff] %vm406_vm0, %v869_v58  ;;  %v874_v4 = vmul.f32 0.16666667, %v842_v33  ;;  %2417 = vmatpush3.bf16.msra.mxu1 %v2416_v31  ;;  %v2419_v52 = vpack.c.bf16 %v1708_v18, %v1707_v0  ;;  %v1578_v53 = vadd.f32 %v1546_v50, %v1510_v59  ;;  %v1138_v50 = vld [vmem:[#allocation2 + $0x168] sm:$0xff] }
 0x219   : > { %v840_v37 = vmul.f32 %v808_v28, %v702_v61  ;;  %v811_v10 = vmin.f32 %v779_v13, 6.0  ;;  %v809_v56 = vmin.f32 %v777_v24, 6.0  ;;  %v4215_v63 = vmov 0.0|0.0   ;;  %v1140_v18 = vld [vmem:[#allocation2 + $0x188] sm:$0xff] }
 0x21a   : > { %2418 = vmatprep.subr.bf16.mxu1 %v4215_v63  ;;  %v4216_v36 = vmov 0.0   ;;  %v1445_v5 = vadd.f32 %v3442_v12, %v1341_v40  ;;  %v1481_v9 = vmul.f32 %v4196_v20, %v1375_v6  ;;  %v1511_v60 = vadd.f32 %v3453_v17, %v1443_v38  ;;  %906 = vst.msk [vmem:[#allocation2 + $0x208] sm:$0xff] %vm406_vm0, %v874_v4 }
 0x21b   : > { %2407 = vmatprep.mubr.msk.f32.mxu1 %vm2596_vm3, %v4216_v36  ;;  %v1547_v42 = vmul.f32 %v2983_v39, %v1375_v6  ;;  %v1036_v61 = vadd.f32 %v1004_v1, %v3506_v34  ;;  %v872_v59 = vmul.f32 0.16666667, %v840_v37  ;;  %v843_v47 = vmul.f32 %v811_v10, %v713_v45  ;;  %v1141_v10 = vld [vmem:[#allocation2 + $0x190] sm:$0xff] }
 0x21c   : > { %v841_v19 = vmul.f32 %v809_v56, %v705_v57  ;;  %v1072_v0 = vmul.f32 %v2938_v43, %v932_v44  ;;  %v1274_v58 = vadd.f32 %v3517_v49, %v1206_v27  ;;  %v1005_v12 = vmul.f32 %v2924_v26, %v3618_v16  ;;  %2420 = vmatpush3.bf16.msra.mxu1 %v2419_v52  ;;  %v933_v27 = vld [vmem:[#allocation2 + $0x18f] sm:$0xff] }
 0x21d   : > { %v1103_v40 = vadd.f32 %v1071_v46, %v1035_v14  ;;  %v1512_v17 = vadd.f32 %v1480_v22, %v1444_v62  ;;  %v3648_v38 = vadd.f32 %v3106_v7, %v1578_v53  ;;  %904 = vst.msk [vmem:[#allocation2 + $0x1e8] sm:$0xff] %vm406_vm0, %v872_v59  ;;  %v875_v34 = vmul.f32 0.16666667, %v843_v47  ;;  %2410 = vmatprep.subr.mxu1 %v4216_v36  ;;  %v937_v36 = vld [vmem:[#allocation2 + $0x1cf] sm:$0xff] }
 0x21e   : > { %v873_v1 = vmul.f32 0.16666667, %v841_v19  ;;  %v3653_v45 = vmul.f32 %v2965_v11, %v1375_v6  ;;  %v1513_v57 = vadd.f32 %v1481_v9, %v1445_v5  ;;  %v1579_v49 = vadd.f32 %v1547_v42, %v1511_v60  ;;  %v3689_v9 = vld [vmem:[#allocation2 + $0x189] sm:$0xff] }
 0x21f   : > { %4217 = vst [vmem:[#allocation19_spill] sm:$0xff] %v3648_v38  ;;  %v1310_v33 = vmul.f32 %v2957_v3, %v1138_v50  ;;  %v972_v14 = vmul.f32 %v2918_v23, %v932_v44  ;;  %v1006_v22 = vmul.f32 %v2924_v26, %v932_v44  ;;  %v3659_v62 = vmul.f32 %v2946_v54, %v1140_v18  ;;  %v934_v44 = vld [vmem:[#allocation2 + $0x1a7] sm:$0xff] }
 0x220   : > { %v1104_v31 = vadd.f32 %v1072_v0, %v1036_v61  ;;  %907 = vst.msk [vmem:[#allocation2 + $0x210] sm:$0xff] %vm406_vm0, %v875_v34  ;;  %905 = vst.msk [vmem:[#allocation2 + $0x1f0] sm:$0xff] %vm406_vm0, %v873_v1  ;;  %v3664_v6 = vmul.f32 %v2955_v2, %v1140_v18  ;;  %v1037_v13 = vadd.f32 %v1005_v12, %v3551_v55  ;;  %v3673_v4 = vsel %vm406_vm0, %v3648_v38, 0.0  ;;  %v1378_v0 = vld [vmem:[#allocation2 + $0x169] sm:$0xff]  ;;  %v3720_v34 = vld [vmem:[#allocation2 + $0x171] sm:$0xff] }
 0x221   : > { %v1342_v28 = vadd.f32 %v1310_v33, %v1274_v58  ;;  %v1207_v24 = vadd.f32 %v3601_v8, %v1103_v40  ;;  %v3669_v46 = vadd.f32 %v3583_v15, %v1512_v17  ;;  %4219 = vst [vmem:[#allocation21_spill] sm:$0xff] %v3673_v4  ;;  %v1312_v52 = vmul.f32 %v2957_v3, %v1140_v18  ;;  %v936_v18 = vld [vmem:[#allocation2 + $0x1c7] sm:$0xff] }
 0x222   : > { %v970_v53 = vmul.f32 %v2918_v23, %v3570_v29  ;;  %v3679_v37 = vadd.f32 %v3586_v51, %v1513_v57  ;;  %v3682_v55 = vadd.f32 %v3106_v7, %v1579_v49  ;;  %v1178_v8 = vmul.f32 %v2946_v54, %v1138_v50  ;;  %v1139_v51 = vld [vmem:[#allocation2 + $0x170] sm:$0xff] }
 0x223   : > { %4218 = vst [vmem:[#allocation20_spill] sm:$0xff] %v3669_v46  ;;  %v1073_v15 = vmul.f32 %v2938_v43, %v933_v27  ;;  %v1208_v56 = vadd.f32 %v3514_v41, %v1104_v31  ;;  %v1244_v63 = vmul.f32 %v2955_v2, %v1138_v50  ;;  %v1007_v5 = vmul.f32 %v2924_v26, %v933_v27 }
 0x224   : > { %4220 = vst [vmem:[#allocation22_spill] sm:$0xff] %v3679_v37  ;;  %4221 = vst [vmem:[#allocation23_spill] sm:$0xff] %v3682_v55  ;;  %v971_v29 = vmul.f32 %v2918_v23, %v3618_v16  ;;  %v1446_v7 = vadd.f32 %v3604_v21, %v1342_v28  ;;  %v1275_v42 = vadd.f32 %v3560_v25, %v1207_v24 }
 0x225   : > { %v1105_v60 = vadd.f32 %v1073_v15, %v1037_v13  ;;  %v1008_v61 = vmul.f32 %v2924_v26, %v934_v44  ;;  %v1038_v59 = vadd.f32 %v1006_v22, %v970_v53  ;;  %v3697_v41 = vmul.f32 %v2918_v23, %v933_v27  ;;  %v1142_v22 = vld [vmem:[#allocation2 + $0x1a8] sm:$0xff] }
 0x226   : > { %v3700_v50 = vmul.f32 %v2946_v54, %v1141_v10  ;;  %v1074_v47 = vmul.f32 %v2938_v43, %v934_v44  ;;  %v3704_v19 = vmul.f32 %v2955_v2, %v1141_v10  ;;  %v3707_v16 = vmul.f32 %v2957_v3, %v1141_v10 }
 0x227   : > { %v3711_v25 = vmul.f32 %v2983_v39, %v3689_v9  ;;  %v1311_v21 = vmul.f32 %v2957_v3, %v1139_v51  ;;  %v1276_v58 = vadd.f32 %v1244_v63, %v1208_v56  ;;  %v3714_v12 = vadd.f32 %v1007_v5, %v971_v29  ;;  %v935_v63 = vld [vmem:[#allocation2 + $0x1af] sm:$0xff] }
 0x228   : > { %v3717_v40 = vmul.f32 %v2946_v54, %v1139_v51  ;;  %v1245_v17 = vmul.f32 %v2955_v2, %v1139_v51  ;;  %v1209_v1 = vadd.f32 %v3557_v35, %v1105_v60  ;;  %v1514_v49 = vadd.f32 %v3574_v32, %v1446_v7  ;;  %v943_v5 = vld [vmem:[#allocation2 + $0x22f] sm:$0xff] }
 0x229   : > { %4222 = vst [vmem:[#allocation24_spill] sm:$0xff] %v3711_v25  ;;  %v1343_v57 = vadd.f32 %v1311_v21, %v1275_v42  ;;  %v1040_v33 = vadd.f32 %v1008_v61, %v972_v14  ;;  %v3725_v31 = vmul.f32 %v2965_v11, %v1378_v0  ;;  %v1010_v27 = vmul.f32 %v2924_v26, %v936_v18  ;;  %v942_v14 = vld [vmem:[#allocation2 + $0x227] sm:$0xff]  ;;  %v941_v21 = vld [vmem:[#allocation2 + $0x20f] sm:$0xff] }
 0x22a   : > { %v974_v28 = vmul.f32 %v2918_v23, %v934_v44  ;;  %v1106_v13 = vadd.f32 %v1074_v47, %v1038_v59  ;;  %v3730_v24 = vmul.f32 %v4196_v20, %v1378_v0  ;;  %v3734_v53 = vmul.f32 %v4196_v20, %v3720_v34  ;;  %v1144_v29 = vld [vmem:[#allocation2 + $0x1c8] sm:$0xff] }
 0x22b   : > { %v1550_v35 = vmul.f32 %v2983_v39, %v1378_v0  ;;  %v1076_v32 = vmul.f32 %v2938_v43, %v936_v18  ;;  %v3738_v15 = vadd.f32 %v1312_v52, %v1276_v58  ;;  %v3742_v10 = vmul.f32 %v2983_v39, %v3720_v34  ;;  %v938_v52 = vld [vmem:[#allocation2 + $0x1e7] sm:$0xff]  ;;  %v939_v47 = vld [vmem:[#allocation2 + $0x1ef] sm:$0xff] }
 0x22c   : > { %4223 = vst [vmem:[#allocation36_spill] sm:$0xff] %v3734_v53  ;;  %v1248_v44 = vmul.f32 %v2955_v2, %v1142_v22  ;;  %v3746_v56 = vmul.f32 %v2957_v3, %v1142_v22  ;;  %v1277_v51 = vadd.f32 %v1245_v17, %v1209_v1  ;;  %v3749_v7 = vadd.f32 %v3653_v45, %v1343_v57  ;;  %v940_v42 = vld [vmem:[#allocation2 + $0x207] sm:$0xff] }
 0x22d   : > { %4224 = vst [vmem:[#allocation37_spill] sm:$0xff] %v3742_v10  ;;  %v3751_v60 = vadd.f32 %v1550_v35, %v1514_v49  ;;  %v1108_v61 = vadd.f32 %v1076_v32, %v1040_v33  ;;  %v1210_v59 = vadd.f32 %v1178_v8, %v1106_v13  ;;  %v976_v0 = vmul.f32 %v2918_v23, %v936_v18  ;;  %v1150_v13 = vld [vmem:[#allocation2 + $0x228] sm:$0xff] }
 0x22e   : > { %v1042_v58 = vadd.f32 %v1010_v27, %v974_v28  ;;  %v1082_v38 = vmul.f32 %v2938_v43, %v942_v14  ;;  %v1009_v25 = vmul.f32 %v2924_v26, %v935_v63  ;;  %v1083_v17 = vmul.f32 %v2938_v43, %v943_v5  ;;  %v1145_v5 = vld [vmem:[#allocation2 + $0x1d0] sm:$0xff] }
 0x22f   : > { %4225 = vst [vmem:[#allocation38_spill] sm:$0xff] %v3751_v60  ;;  %v1182_v45 = vmul.f32 %v2946_v54, %v1142_v22  ;;  %v1184_v1 = vmul.f32 %v2946_v54, %v1144_v29  ;;  %v978_v57 = vmul.f32 %v2918_v23, %v938_v52  ;;  %v1012_v8 = vmul.f32 %v2924_v26, %v938_v52 }
 0x230   : > { %v1014_v49 = vmul.f32 %v2924_v26, %v940_v42  ;;  %v3763_v18 = vmul.f32 %v2955_v2, %v1144_v29  ;;  %v979_v33 = vmul.f32 %v2918_v23, %v939_v47  ;;  %v1013_v27 = vmul.f32 %v2924_v26, %v939_v47 }
 0x231   : > { %v1015_v28 = vmul.f32 %v2924_v26, %v941_v21  ;;  %v1212_v22 = vadd.f32 %v3659_v62, %v1108_v61  ;;  %v1011_v35 = vmul.f32 %v2924_v26, %v937_v36  ;;  %v975_v32 = vmul.f32 %v2918_v23, %v935_v63 }
 0x232   : > { %v1075_v14 = vmul.f32 %v2938_v43, %v935_v63  ;;  %v1278_v39 = vadd.f32 %v3664_v6, %v1210_v59  ;;  %v1041_v60 = vadd.f32 %v1009_v25, %v3697_v41  ;;  %v977_v37 = vmul.f32 %v2918_v23, %v937_v36  ;;  %v1143_v59 = vld [vmem:[#allocation2 + $0x1b0] sm:$0xff] }
 0x233   : > { %v1078_v53 = vmul.f32 %v2938_v43, %v938_v52  ;;  %v1316_v4 = vmul.f32 %v2957_v3, %v1144_v29  ;;  %v1044_v55 = vadd.f32 %v1012_v8, %v976_v0  ;;  %v1046_v46 = vadd.f32 %v1014_v49, %v978_v57  ;;  %v1151_v52 = vld [vmem:[#allocation2 + $0x230] sm:$0xff]  ;;  %v1146_v8 = vld [vmem:[#allocation2 + $0x1e8] sm:$0xff] }
 0x234   : > { %v1079_v62 = vmul.f32 %v2938_v43, %v939_v47  ;;  %v3779_v26 = vmul.f32 %v2957_v3, %v1150_v13  ;;  %v1077_v63 = vmul.f32 %v2938_v43, %v937_v36  ;;  %v1045_v61 = vadd.f32 %v1013_v27, %v977_v37  ;;  %v1147_v27 = vld [vmem:[#allocation2 + $0x1f0] sm:$0xff] }
 0x235   : > { %v1047_v10 = vadd.f32 %v1015_v28, %v979_v33  ;;  %v1185_v6 = vmul.f32 %v2946_v54, %v1145_v5  ;;  %v1107_v41 = vadd.f32 %v1075_v14, %v3714_v12  ;;  %v1043_v23 = vadd.f32 %v1011_v35, %v975_v32 }
 0x236   : > { %v1080_v25 = vmul.f32 %v2938_v43, %v940_v42  ;;  %v1251_v29 = vmul.f32 %v2955_v2, %v1145_v5  ;;  %v1081_v47 = vmul.f32 %v2938_v43, %v941_v21  ;;  %v1109_v0 = vadd.f32 %v1077_v63, %v1041_v60  ;;  %v1149_v21 = vld [vmem:[#allocation2 + $0x210] sm:$0xff] }
 0x237   : > { %v1110_v57 = vadd.f32 %v1078_v53, %v1042_v58  ;;  %v1280_v49 = vadd.f32 %v1248_v44, %v1212_v22  ;;  %v1111_v36 = vadd.f32 %v1079_v62, %v1043_v23  ;;  %v1114_v33 = vadd.f32 %v1082_v38, %v1046_v46  ;;  %v1148_v38 = vld [vmem:[#allocation2 + $0x208] sm:$0xff] }
 0x238   : > { %v1112_v37 = vadd.f32 %v1080_v25, %v1044_v55  ;;  %v1317_v28 = vmul.f32 %v2957_v3, %v1145_v5  ;;  %v1113_v12 = vadd.f32 %v1081_v47, %v1045_v61  ;;  %v1115_v13 = vadd.f32 %v1083_v17, %v1047_v10 }
 0x239   : > { %v1323_v42 = vmul.f32 %v2957_v3, %v1151_v52  ;;  %v1345_v35 = vadd.f32 %v3707_v16, %v1277_v51  ;;  %v1183_v32 = vmul.f32 %v2946_v54, %v1143_v59  ;;  %v1186_v43 = vmul.f32 %v2946_v54, %v1146_v8 }
 0x23a   : > { %v1211_v53 = vadd.f32 %v3717_v40, %v1107_v41  ;;  %v1346_v44 = vadd.f32 %v3746_v56, %v1278_v39  ;;  %v1315_v55 = vmul.f32 %v2957_v3, %v1143_v59  ;;  %v1187_v46 = vmul.f32 %v2946_v54, %v1147_v27 }
 0x23b   : > { %v1213_v60 = vadd.f32 %v3700_v50, %v1109_v0  ;;  %v1214_v10 = vadd.f32 %v1182_v45, %v1110_v57  ;;  %v1215_v58 = vadd.f32 %v1183_v32, %v1111_v36  ;;  %v1216_v17 = vadd.f32 %v1184_v1, %v1112_v37  ;;  %v1381_v45 = vld [vmem:[#allocation2 + $0x191] sm:$0xff]  ;;  %v1384_v36 = vld [vmem:[#allocation2 + $0x1c9] sm:$0xff] }
 0x23c   : > { %v1218_v16 = vadd.f32 %v1186_v43, %v1114_v33  ;;  %v1249_v51 = vmul.f32 %v2955_v2, %v1143_v59  ;;  %v1217_v22 = vadd.f32 %v1185_v6, %v1113_v12  ;;  %v1219_v14 = vadd.f32 %v1187_v46, %v1115_v13  ;;  %v1383_v59 = vld [vmem:[#allocation2 + $0x1b1] sm:$0xff] }
 0x23d   : > { %v1348_v5 = vadd.f32 %v1316_v4, %v1280_v49  ;;  %v1419_v39 = vmul.f32 %v2965_v11, %v3720_v34  ;;  %v1252_v40 = vmul.f32 %v2955_v2, %v1146_v8  ;;  %v1254_v56 = vmul.f32 %v2955_v2, %v1148_v38  ;;  %v1382_v4 = vld [vmem:[#allocation2 + $0x1a9] sm:$0xff]  ;;  %v4226_v43 = vld [vmem:[#allocation18_spill] sm:$0xff] }
 0x23e   : > { %v1279_v54 = vadd.f32 %v3704_v19, %v1211_v53  ;;  %v1320_v50 = vmul.f32 %v2957_v3, %v1148_v38  ;;  %v1253_v1 = vmul.f32 %v2955_v2, %v1147_v27  ;;  %v1255_v62 = vmul.f32 %v2955_v2, %v1149_v21 }
 0x23f   : > { %v1281_v63 = vadd.f32 %v1249_v51, %v1213_v60  ;;  %v1282_v61 = vadd.f32 %v3763_v18, %v1214_v10  ;;  %v1283_v6 = vadd.f32 %v1251_v29, %v1215_v58  ;;  %v1284_v41 = vadd.f32 %v1252_v40, %v1216_v17  ;;  %v4229_v60 = vld [vmem:[#allocation37_spill] sm:$0xff]  ;;  %v4233_v51 = vld [vmem:[#allocation36_spill] sm:$0xff] }
 0x240   : > { %v1286_v34 = vadd.f32 %v1254_v56, %v1218_v16  ;;  %v1420_v23 = vmul.f32 %v2965_v11, %v3689_v9  ;;  %v1285_v25 = vadd.f32 %v1253_v1, %v1217_v22  ;;  %v1287_v52 = vadd.f32 %v1255_v62, %v1219_v14  ;;  %v4235_v56 = vld [vmem:[#allocation38_spill] sm:$0xff]  ;;  %v4236_v62 = vld [vmem:[#allocation15_spill] sm:$0xff] }
 0x241   : > { %v1318_v19 = vmul.f32 %v2957_v3, %v1146_v8  ;;  %v1421_v47 = vmul.f32 %v2965_v11, %v1381_v45  ;;  %v1319_v0 = vmul.f32 %v2957_v3, %v1147_v27  ;;  %v1321_v2 = vmul.f32 %v2957_v3, %v1149_v21 }
 0x242   : > { %v1347_v57 = vadd.f32 %v1315_v55, %v1279_v54  ;;  %v1422_v18 = vmul.f32 %v2965_v11, %v1382_v4  ;;  %v1349_v29 = vadd.f32 %v1317_v28, %v1281_v63  ;;  %v1448_v37 = vadd.f32 %v3564_v30, %v3738_v15  ;;  %v1385_v28 = vld [vmem:[#allocation2 + $0x1d1] sm:$0xff] }
 0x243   : > { %v1350_v49 = vadd.f32 %v1318_v19, %v1282_v61  ;;  %v1515_v33 = vadd.f32 %v3577_v48, %v3749_v7  ;;  %v1351_v8 = vadd.f32 %v1319_v0, %v1283_v6  ;;  %v1352_v12 = vadd.f32 %v1320_v50, %v1284_v41  ;;  %v4227_v7 = vld [vmem:[#allocation31_spill] sm:$0xff]  ;;  %v4237_v6 = vld [vmem:[#allocation24_spill] sm:$0xff] }
 0x244   : > { %v3819_v13 = vadd.f32 %v3779_v26, %v1286_v34  ;;  %v1423_v27 = vmul.f32 %v2965_v11, %v1383_v59  ;;  %v3822_v3 = vadd.f32 %v1321_v2, %v1285_v25  ;;  %v3824_v32 = vadd.f32 %v1323_v42, %v1287_v52  ;;  %v4228_v26 = vld [vmem:[#allocation17_spill] sm:$0xff]  ;;  %v3838_v42 = vld [vmem:[%s4124_s4] ss:$0 sm:$0xff] }
 0x245   : > { %v1449_v53 = vadd.f32 %v4226_v43, %v1345_v35  ;;  %v1450_v55 = vadd.f32 %v3725_v31, %v1346_v44  ;;  %v1424_v30 = vmul.f32 %v2965_v11, %v1384_v36  ;;  %v1451_v15 = vadd.f32 %v1419_v39, %v1347_v57  ;;  %v4230_v35 = vld [vmem:[#allocation20_spill] sm:$0xff]  ;;  %v4231_v44 = vld [vmem:[#allocation23_spill] sm:$0xff]  ;;  %v4234_v39 = vld [vmem:[#allocation22_spill] sm:$0xff] }
 0x246   : > { %v1486_v48 = vmul.f32 %v4196_v20, %v3689_v9  ;;  %v1661_v38 = vadd.f32 %v4228_v26, %v4227_v7  ;;  %v1516_v46 = vadd.f32 %v3730_v24, %v1448_v37  ;;  %v1583_v10 = vadd.f32 %v4229_v60, %v1515_v33  ;;  %v4232_v24 = vld [vmem:[#allocation21_spill] sm:$0xff] }
 0x247   : > { %v3842_v31 = vadd.f32 %v3838_v42, %v4230_v35  ;;  %v1664_v21 = vsel %vm406_vm0, %v4231_v44, 0.0  ;;  %v1425_v9 = vmul.f32 %v2965_v11, %v1385_v28  ;;  %v1452_v58 = vadd.f32 %v1420_v23, %v1348_v5  ;;  %v1386_v0 = vld [vmem:[#allocation2 + $0x1e9] sm:$0xff] }
 0x248   : > { %v1487_v17 = vmul.f32 %v4196_v20, %v1381_v45  ;;  %v1663_v16 = vadd.f32 %v4232_v24, %v1661_v38  ;;  %v1517_v22 = vadd.f32 %v4233_v51, %v1449_v53  ;;  %v1518_v14 = vadd.f32 %v1486_v48, %v1450_v55 }
 0x249   : > { %v3852_v40 = vadd.f32 %v3838_v42, %v4234_v39  ;;  %v3856_v54 = vadd.f32 %v3838_v42, %v4235_v56  ;;  %v1453_v50 = vadd.f32 %v1421_v47, %v1349_v29  ;;  %v1553_v63 = vmul.f32 %v4236_v62, %v1381_v45 }
 0x24a   : > { %v1519_v1 = vadd.f32 %v1487_v17, %v1451_v15  ;;  %v1665_v5 = vadd.f32 %v1664_v21, %v1663_v16  ;;  %v1554_v61 = vmul.f32 %v4236_v62, %v1382_v4  ;;  %v1584_v41 = vadd.f32 %v4237_v6, %v1516_v46 }
 0x24b   : > { %v3862_v34 = vadd.f32 %v3838_v42, %v1583_v10  ;;  %v1666_v23 = vsel %vm406_vm0, %v3842_v31, 0.0  ;;  %v1454_v25 = vadd.f32 %v1422_v18, %v1350_v49  ;;  %v1488_v52 = vmul.f32 %v4196_v20, %v1382_v4 }
 0x24c   : > { %v1555_v19 = vmul.f32 %v4236_v62, %v1383_v59  ;;  %v1667_v47 = vadd.f32 %v1666_v23, %v1665_v5  ;;  %v1585_v2 = vadd.f32 %v1553_v63, %v1517_v22  ;;  %v1586_v45 = vadd.f32 %v1554_v61, %v1518_v14  ;;  %v1389_v63 = vld [vmem:[#allocation2 + $0x211] sm:$0xff]  ;;  %v1390_v23 = vld [vmem:[#allocation2 + $0x229] sm:$0xff] }
 0x24d   : > { %v1668_v57 = vsel %vm406_vm0, %v3852_v40, 0.0  ;;  %v1670_v29 = vsel %vm406_vm0, %v3856_v54, 0.0  ;;  %v1455_v37 = vadd.f32 %v1423_v27, %v1351_v8  ;;  %v1489_v33 = vmul.f32 %v4196_v20, %v1383_v59  ;;  %v1387_v8 = vld [vmem:[#allocation2 + $0x1f1] sm:$0xff] }
 0x24e   : > { %v1490_v43 = vmul.f32 %v4196_v20, %v1384_v36  ;;  %v1669_v18 = vadd.f32 %v1668_v57, %v1667_v47  ;;  %v1520_v49 = vadd.f32 %v1488_v52, %v1452_v58  ;;  %v1587_v4 = vadd.f32 %v1555_v19, %v1519_v1 }
 0x24f   : > { %v3875_v53 = vadd.f32 %v3838_v42, %v1584_v41  ;;  %v1672_v55 = vsel %vm406_vm0, %v3862_v34, 0.0  ;;  %v1426_v15 = vmul.f32 %v2965_v11, %v1386_v0  ;;  %v1491_v48 = vmul.f32 %v4196_v20, %v1385_v28 }
 0x250   : > { %v1521_v7 = vadd.f32 %v1489_v33, %v1453_v50  ;;  %v1671_v26 = vadd.f32 %v1670_v29, %v1669_v18  ;;  %v1522_v27 = vadd.f32 %v1490_v43, %v1454_v25  ;;  %v1556_v59 = vmul.f32 %v4236_v62, %v1384_v36 }
 0x251   : > { %v3883_v38 = vadd.f32 %v3838_v42, %v1585_v2  ;;  %v3886_v46 = vadd.f32 %v3838_v42, %v1586_v45  ;;  %v1456_v60 = vadd.f32 %v1424_v30, %v1352_v12  ;;  %v1523_v10 = vadd.f32 %v1491_v48, %v1455_v37  ;;  %v1388_v30 = vld [vmem:[#allocation2 + $0x209] sm:$0xff]  ;;  %v1391_v2 = vld [vmem:[#allocation2 + $0x231] sm:$0xff] }
 0x252   : > { %v1557_v35 = vmul.f32 %v4236_v62, %v1385_v28  ;;  %v1673_v21 = vadd.f32 %v1672_v55, %v1671_v26  ;;  %v1558_v58 = vmul.f32 %v4236_v62, %v1386_v0  ;;  %v1588_v17 = vadd.f32 %v1556_v59, %v1520_v49 }
 0x253   : > { %v3891_v24 = vadd.f32 %v3838_v42, %v1587_v4  ;;  %v1674_v36 = vsel %vm406_vm0, %v3875_v53, 0.0  ;;  %v1457_v16 = vadd.f32 %v1425_v9, %v3822_v3  ;;  %v1492_v51 = vmul.f32 %v4196_v20, %v1386_v0 }
 0x254   : > { %v1559_v22 = vmul.f32 %v4236_v62, %v1387_v8  ;;  %v1675_v12 = vadd.f32 %v1674_v36, %v1673_v21  ;;  %v1589_v14 = vadd.f32 %v1557_v35, %v1521_v7  ;;  %v1590_v28 = vadd.f32 %v1558_v58, %v1522_v27 }
 0x255   : > { %v1676_v39 = vsel %vm406_vm0, %v3883_v38, 0.0  ;;  %v1678_v56 = vsel %vm406_vm0, %v3886_v46, 0.0  ;;  %v1427_v50 = vmul.f32 %v2965_v11, %v1387_v8  ;;  %v1458_v1 = vadd.f32 %v1426_v15, %v3819_v13 }
 0x256   : > { %v1493_v3 = vmul.f32 %v4196_v20, %v1387_v8  ;;  %v1677_v9 = vadd.f32 %v1676_v39, %v1675_v12  ;;  %v1524_v5 = vadd.f32 %v1492_v51, %v1456_v60  ;;  %v1591_v61 = vadd.f32 %v1559_v22, %v1523_v10 }
 0x257   : > { %v3906_v6 = vadd.f32 %v3838_v42, %v1588_v17  ;;  %v1680_v41 = vsel %vm406_vm0, %v3891_v24, 0.0  ;;  %v1459_v25 = vadd.f32 %v1427_v50, %v3824_v32  ;;  %v1494_v52 = vmul.f32 %v4196_v20, %v1388_v30 }
 0x258   : > { %v1679_v11 = vadd.f32 %v1678_v56, %v1677_v9  ;;  %v1525_v19 = vadd.f32 %v1493_v3, %v1457_v16  ;;  %v1560_v13 = vmul.f32 %v4236_v62, %v1388_v30  ;;  %v3914_v47 = vadd.f32 %v3838_v42, %v1589_v14  ;;  %v1784_v9 = vld [vmem:[%s4127_s7] sm:$0xff] }
 0x259   : > { %v3917_v0 = vadd.f32 %v3838_v42, %v1590_v28  ;;  %v1495_v45 = vmul.f32 %v4196_v20, %v1389_v63  ;;  %v1526_v57 = vadd.f32 %v1494_v52, %v1458_v1  ;;  %v1561_v29 = vmul.f32 %v4236_v62, %v1389_v63  ;;  %v1709_v63 = vld [vmem:[%s4126_s6] sm:$0x1] }
 0x25a   : > { %v1681_v37 = vadd.f32 %v1680_v41, %v1679_v11  ;;  %v1562_v32 = vmul.f32 %v4236_v62, %v1390_v23  ;;  %v1592_v33 = vadd.f32 %v1560_v13, %v1524_v5  ;;  %v3923_v43 = vadd.f32 %v3838_v42, %v1591_v61  ;;  %v2078_v52 = vld [vmem:[%s4130_s10] sm:$0xff] }
 0x25b   : > { %v1682_v18 = vsel %vm406_vm0, %v3906_v6, 0.0  ;;  %v1527_v49 = vadd.f32 %v1495_v45, %v1459_v25  ;;  %v1563_v55 = vmul.f32 %v4236_v62, %v1391_v2  ;;  %v1593_v15 = vadd.f32 %v1561_v29, %v1525_v19  ;;  %v3966_v25 = vld [vmem:[%s4129_s9] sm:$0xff]   ;;  %v2079_v19 = vld [vmem:[%s4130_s10 + $0x8] sm:$0xff] }
 0x25c   : > { %v1683_v4 = vadd.f32 %v1682_v18, %v1681_v37  ;;  %v1684_v20 = vsel %vm406_vm0, %v3914_v47, 0.0  ;;  %v1686_v48 = vsel %vm406_vm0, %v3917_v0, 0.0  ;;  %v1594_v26 = vadd.f32 %v1562_v32, %v1526_v57  ;;  %2363 = vmatprep.mubr.msk.bf16.mxu0 %vm406_vm0, %v3966_v25  ;;  %v1785_v13 = vld [vmem:[%s4128_s8] sm:$0x1] }
 0x25d   : > { %v3933_v8 = vadd.f32 %v3838_v42, %v1592_v33  ;;  %v1688_v27 = vsel %vm406_vm0, %v3923_v43, 0.0  ;;  %v1595_v60 = vadd.f32 %v1563_v55, %v1527_v49  ;;  %v3938_v10 = vadd.f32 %v3838_v42, %v1593_v15  ;;  %v4239_v18 = vld [vmem:[#allocation11_spill] sm:$0xff]  ;;  %v4240_v15 = vld [vmem:[#allocation25_spill] sm:$0xff] }
 0x25e   : > { %v1685_v7 = vadd.f32 %v1684_v20, %v1683_v4  ;;  %v3941_v35 = vadd.f32 %v3838_v42, %v1594_v26  ;;  %v4238_v3 = vmov 0.0   ;;  %v2597_v11 = vmov 0  }
 0x25f   : > { %v1690_v21 = vsel %vm406_vm0, %v3933_v8, 0.0  ;;  %v3946_v17 = vadd.f32 %v3838_v42, %v1595_v60  ;;  %v1692_v36 = vsel %vm406_vm0, %v3938_v10, 0.0  ;;  %2483 = vset.pattern.permute.xlu1 %v2597_v11  ;;  %2484 = vset.pattern.permute.xlu0 %v2597_v11 }
 0x260   : > { %v1687_v59 = vadd.f32 %v1686_v48, %v1685_v7  ;;  %v1694_v51 = vsel %vm406_vm0, %v3941_v35, 0.0  ;;  %2082 = vperm.xlu1 %2483, %v2078_v52   ;;  %v4241_v48 = vld [vmem:[#allocation26_spill] sm:$0xff] }
 0x261   : > { %v1696_v12 = vsel %vm406_vm0, %v3946_v17, 0.0 }
 0x262   : > { %v1689_v62 = vadd.f32 %v1688_v27, %v1687_v59  ;;  %v4242_v59 = vld [vmem:[#allocation27_spill] sm:$0xff] }
 0x264   : > { %v1691_v58 = vadd.f32 %v1690_v21, %v1689_v62  ;;  %2087 = vperm.xlu1 %2483, %v2079_v19   ;;  %v4243_v62 = vld [vmem:[#allocation28_spill] sm:$0xff] }
 0x266   : > { %v1693_v16 = vadd.f32 %v1692_v36, %v1691_v58 }
 0x268   : > { %v1695_v22 = vadd.f32 %v1694_v51, %v1693_v16 }
 0x26a   : > { %v1697_v30 = vadd.f32 %v1696_v12, %v1695_v22 }
 0x26c   : > { %v1698_v14 = vrot.slane %v1697_v30, 4 }
 0x26e   : > { %v1699_v28 = vadd.f32 %v1698_v14, %v1697_v30 }
 0x270   : > { %v1700_v39 = vrot.slane %v1699_v28, 2 }
 0x272   : > { %v1701_v56 = vadd.f32 %v1700_v39, %v1699_v28 }
 0x274   : > { %v1702_v50 = vrot.slane %v1701_v56, 1 }
 0x276   : > { %v1703_v1 = vadd.f32 %v1702_v50, %v1701_v56 }
 0x278   : > { %v1704_v42 = vmul.f32 0.00390625, %v1703_v1 }
 0x27a   : > { %2408 = vmatmul.mubr.msk.f32.vlgmr.msra.gmra.mrb[0].mxu1 %vm406_vm0, %v1704_v42 }
 0x27b   : > { %2412 = vmatprep.mubr.msk.f32.mxu1 %vm2596_vm3, %v4238_v3  ;;  %2411 = vmatpush3.msra.mxu1 %v1784_v9 }
 0x34d   : > { %v1779_v5 = vpop.f32.mrb[0].mxu1 }
 0x34e   : > { %v1780_v61 = vadd.f32 %v1779_v5, %v1709_v63  ;;  %v2409_v41 = vpop.f32.mrb[1].mxu1 }
 0x350   : > { %v1783_v23 = vmax.f32 %v1780_v61, 0.0 }
 0x352   : > { %2413 = vmatmul.mubr.msk.f32.vlgmr.msra.gmra.mrb[2].mxu1 %vm1786_vm4, %v1783_v23 }
 0x425   : > { %v1856_v2 = vpop.f32.mrb[2].mxu1 }
 0x426   : > { %v1857_v45 = vadd.f32 %v1856_v2, %v1785_v13  ;;  %v2414_v57 = vpop.f32.mrb[3].mxu1 }
 0x428   : > { %v1860_v29 = vadd.f32 3.0, %v1857_v45 }
 0x42a   : > { %v1861_v37 = vmax.f32 %v1860_v29, 0.0 }
 0x42c   : > { %v1862_v32 = vmin.f32 %v1861_v37, 6.0 }
 0x42e   : > { %v1863_v33 = vmul.f32 0.16666667, %v1862_v32 }
 0x430   : > { %v3980_v49 = vrot.slane %v1863_v33, %v4239_v18 }
 0x432   : > { %v1884_v4 = vmul.f32 %v3980_v49, %v3842_v31  ;;  %v1885_v55 = vmul.f32 %v3980_v49, %v3852_v40  ;;  %v1868_v20 = vmul.f32 %v3980_v49, %v4240_v15  ;;  %v1869_v7 = vmul.f32 %v3980_v49, %v4241_v48 }
 0x433   : > { %v1886_v26 = vmul.f32 %v3980_v49, %v3856_v54  ;;  %v1887_v27 = vmul.f32 %v3980_v49, %v3862_v34  ;;  %v1870_v60 = vmul.f32 %v3980_v49, %v4242_v59  ;;  %v1871_v31 = vmul.f32 %v3980_v49, %v4243_v62  ;;  %v4244_v62 = vld [vmem:[#allocation29_spill] sm:$0xff] }
 0x434   : > { %v1916_v21 = vadd.f32 3.0, %v1884_v4  ;;  %v1917_v40 = vadd.f32 3.0, %v1885_v55  ;;  %v1900_v58 = vadd.f32 3.0, %v1868_v20  ;;  %v1901_v36 = vadd.f32 3.0, %v1869_v7 }
 0x435   : > { %v1918_v16 = vadd.f32 3.0, %v1886_v26  ;;  %v1919_v51 = vadd.f32 3.0, %v1887_v27  ;;  %v1902_v22 = vadd.f32 3.0, %v1870_v60  ;;  %v1903_v12 = vadd.f32 3.0, %v1871_v31 }
 0x436   : > { %v1948_v30 = vmax.f32 %v1916_v21, 0.0  ;;  %v1949_v14 = vmax.f32 %v1917_v40, 0.0  ;;  %v1932_v54 = vmax.f32 %v1900_v58, 0.0  ;;  %v1933_v28 = vmax.f32 %v1901_v36, 0.0  ;;  %v4245_v40 = vld [vmem:[#allocation30_spill] sm:$0xff] }
 0x437   : > { %v1950_v39 = vmax.f32 %v1918_v16, 0.0  ;;  %v1951_v34 = vmax.f32 %v1919_v51, 0.0  ;;  %v1934_v56 = vmax.f32 %v1902_v22, 0.0  ;;  %v1935_v50 = vmax.f32 %v1903_v12, 0.0 }
 0x438   : > { %v1980_v1 = vmin.f32 %v1948_v30, 6.0  ;;  %v1981_v42 = vmin.f32 %v1949_v14, 6.0  ;;  %v1964_v3 = vmin.f32 %v1932_v54, 6.0  ;;  %v1965_v9 = vmin.f32 %v1933_v28, 6.0 }
 0x439   : > { %v1982_v63 = vmin.f32 %v1950_v39, 6.0  ;;  %v1983_v5 = vmin.f32 %v1951_v34, 6.0  ;;  %v1966_v61 = vmin.f32 %v1934_v56, 6.0  ;;  %v1967_v41 = vmin.f32 %v1935_v50, 6.0  ;;  %v4246_v56 = vld [vmem:[#allocation34_spill] sm:$0xff] }
 0x43a   : > { %v2012_v23 = vmul.f32 %v1980_v1, %v1884_v4  ;;  %v2013_v52 = vmul.f32 %v1981_v42, %v1885_v55  ;;  %v1996_v11 = vmul.f32 %v1964_v3, %v1868_v20  ;;  %v1997_v19 = vmul.f32 %v1965_v9, %v1869_v7  ;;  %v4247_v3 = vld [vmem:[#allocation35_spill] sm:$0xff] }
 0x43b   : > { %v2014_v13 = vmul.f32 %v1982_v63, %v1886_v26  ;;  %v2015_v2 = vmul.f32 %v1983_v5, %v1887_v27  ;;  %v1998_v45 = vmul.f32 %v1966_v61, %v1870_v60  ;;  %v1999_v57 = vmul.f32 %v1967_v41, %v1871_v31 }
 0x43c   : > { %v2044_v29 = vmul.f32 0.16666667, %v2012_v23  ;;  %v2045_v37 = vmul.f32 0.16666667, %v2013_v52  ;;  %v2028_v32 = vmul.f32 0.16666667, %v1996_v11  ;;  %v1888_v33 = vmul.f32 %v3980_v49, %v3875_v53 }
 0x43d   : > { %v2029_v18 = vmul.f32 0.16666667, %v1997_v19  ;;  %v2046_v15 = vmul.f32 0.16666667, %v2014_v13  ;;  %v2047_v48 = vmul.f32 0.16666667, %v2015_v2  ;;  %v1889_v59 = vmul.f32 %v3980_v49, %v3883_v38 }
 0x43e   : > { %v2070_v4 = vpack.c.bf16 %v2045_v37, %v2044_v29  ;;  %v2030_v55 = vmul.f32 0.16666667, %v1998_v45  ;;  %v2031_v20 = vmul.f32 0.16666667, %v1999_v57  ;;  %v1920_v7 = vadd.f32 3.0, %v1888_v33 }
 0x43f   : > { %v2062_v26 = vpack.c.bf16 %v2029_v18, %v2028_v32  ;;  %v2071_v27 = vpack.c.bf16 %v2047_v48, %v2046_v15  ;;  %v1921_v60 = vadd.f32 3.0, %v1889_v59  ;;  %v1872_v31 = vmul.f32 %v3980_v49, %v4244_v62 }
 0x440   : > { %2421 = vmatprep.subr.msk.bf16.mxu0 %vm406_vm0, %v2070_v4  ;;  %v2063_v21 = vpack.c.bf16 %v2031_v20, %v2030_v55  ;;  %v1952_v53 = vmax.f32 %v1920_v7, 0.0  ;;  %v1873_v58 = vmul.f32 %v3980_v49, %v4245_v40  ;;  %v1890_v38 = vmul.f32 %v3980_v49, %v3886_v46 }
 0x441   : > { %v2099_v36 = vsel %vm406_vm0, %v2062_v26, 0  ;;  %v1953_v16 = vmax.f32 %v1921_v60, 0.0  ;;  %v1904_v51 = vadd.f32 3.0, %v1872_v31  ;;  %v1891_v22 = vmul.f32 %v3980_v49, %v3891_v24  ;;  %v4248_v60 = vld [vmem:[#allocation12_spill] sm:$0xff] }
 0x442   : > { %2348 = vmatpush3.bf16.xpose.msra.mxu0 %v2099_v36  ;;  %v2102_v12 = vsel %vm406_vm0, %v2063_v21, 0  ;;  %v1984_v30 = vmin.f32 %v1952_v53, 6.0  ;;  %v1905_v14 = vadd.f32 3.0, %v1873_v58  ;;  %v1922_v54 = vadd.f32 3.0, %v1890_v38  ;;  %v4249_v53 = vld [vmem:[#allocation14_spill] sm:$0xff] }
 0x443   : > { %2422 = vmatprep.subr.msk.bf16.mxu0 %vm406_vm0, %v2071_v27  ;;  %v1985_v28 = vmin.f32 %v1953_v16, 6.0  ;;  %v1936_v39 = vmax.f32 %v1904_v51, 0.0  ;;  %v1923_v34 = vadd.f32 3.0, %v1891_v22  ;;  %v1874_v46 = vmul.f32 %v3980_v49, %v4246_v56  ;;  %v4250_v56 = vld [vmem:[#allocation32_spill] sm:$0xff] }
 0x444   : > { %v2016_v50 = vmul.f32 %v1984_v30, %v1888_v33  ;;  %v1937_v1 = vmax.f32 %v1905_v14, 0.0  ;;  %v1954_v42 = vmax.f32 %v1922_v54, 0.0  ;;  %v1875_v24 = vmul.f32 %v3980_v49, %v4247_v3 }
 0x445   : > { %v2017_v9 = vmul.f32 %v1985_v28, %v1889_v59  ;;  %v1968_v63 = vmin.f32 %v1936_v39, 6.0  ;;  %v1955_v5 = vmax.f32 %v1923_v34, 0.0  ;;  %v1906_v61 = vadd.f32 3.0, %v1874_v46 }
 0x446   : > { %v2048_v41 = vmul.f32 0.16666667, %v2016_v50  ;;  %v1969_v23 = vmin.f32 %v1937_v1, 6.0  ;;  %v1986_v52 = vmin.f32 %v1954_v42, 6.0  ;;  %v1907_v11 = vadd.f32 3.0, %v1875_v24 }
 0x447   : > { %v2049_v19 = vmul.f32 0.16666667, %v2017_v9  ;;  %v2000_v13 = vmul.f32 %v1968_v63, %v1872_v31  ;;  %v1987_v2 = vmin.f32 %v1955_v5, 6.0  ;;  %v1938_v45 = vmax.f32 %v1906_v61, 0.0  ;;  %v4251_v63 = vld [vmem:[#allocation16_spill] sm:$0xff] }
 0x448   : > { %v2001_v57 = vmul.f32 %v1969_v23, %v1873_v58  ;;  %v2018_v29 = vmul.f32 %v1986_v52, %v1890_v38  ;;  %v1939_v37 = vmax.f32 %v1907_v11, 0.0  ;;  %v1892_v32 = vmul.f32 %v3980_v49, %v3906_v6 }
 0x449   : > { %v2072_v33 = vpack.c.bf16 %v2049_v19, %v2048_v41  ;;  %v2032_v18 = vmul.f32 0.16666667, %v2000_v13  ;;  %v2019_v15 = vmul.f32 %v1987_v2, %v1891_v22  ;;  %v1970_v48 = vmin.f32 %v1938_v45, 6.0 }
 0x44a   : > { %2350 = vmatpush3.bf16.xpose.msra.mxu0 %v2102_v12  ;;  %v2033_v59 = vmul.f32 0.16666667, %v2001_v57  ;;  %v2050_v4 = vmul.f32 0.16666667, %v2018_v29  ;;  %v1971_v55 = vmin.f32 %v1939_v37, 6.0  ;;  %v1893_v20 = vmul.f32 %v3980_v49, %v3914_v47 }
 0x44b   : > { %2423 = vmatprep.subr.msk.bf16.mxu0 %vm406_vm0, %v2072_v33  ;;  %v2051_v7 = vmul.f32 0.16666667, %v2019_v15  ;;  %v2002_v26 = vmul.f32 %v1970_v48, %v1874_v46  ;;  %v1924_v27 = vadd.f32 3.0, %v1892_v32  ;;  %v1876_v62 = vmul.f32 %v3980_v49, %v4248_v60 }
 0x44c   : > { %v2064_v6 = vpack.c.bf16 %v2033_v59, %v2032_v18  ;;  %v2003_v31 = vmul.f32 %v1971_v55, %v1875_v24  ;;  %v1925_v21 = vadd.f32 3.0, %v1893_v20  ;;  %v1877_v40 = vmul.f32 %v3980_v49, %v4249_v53 }
 0x44d   : > { %v2073_v58 = vpack.c.bf16 %v2051_v7, %v2050_v4  ;;  %v1956_v38 = vmax.f32 %v1924_v27, 0.0  ;;  %v1908_v36 = vadd.f32 3.0, %v1876_v62  ;;  %v2034_v16 = vmul.f32 0.16666667, %v2002_v26 }
 0x44e   : > { %v2035_v51 = vmul.f32 0.16666667, %v2003_v31  ;;  %v1957_v47 = vmax.f32 %v1925_v21, 0.0  ;;  %v1909_v22 = vadd.f32 3.0, %v1877_v40  ;;  %v1894_v14 = vmul.f32 %v3980_v49, %v3917_v0  ;;  %v4253_v31 = vld [vmem:[#allocation33_spill] sm:$0xff] }
 0x44f   : > { %v1988_v12 = vmin.f32 %v1956_v38, 6.0  ;;  %v1940_v30 = vmax.f32 %v1908_v36, 0.0  ;;  %v1895_v54 = vmul.f32 %v3980_v49, %v3923_v43  ;;  %v2105_v28 = vsel %vm406_vm0, %v2064_v6, 0 }
 0x450   : > { %v1989_v39 = vmin.f32 %v1957_v47, 6.0  ;;  %v1941_v34 = vmax.f32 %v1909_v22, 0.0  ;;  %v1878_v46 = vmul.f32 %v3980_v49, %v4250_v56  ;;  %v1926_v42 = vadd.f32 3.0, %v1894_v14 }
 0x451   : > { %v2020_v50 = vmul.f32 %v1988_v12, %v1892_v32  ;;  %v1972_v1 = vmin.f32 %v1940_v30, 6.0  ;;  %v1927_v3 = vadd.f32 3.0, %v1895_v54  ;;  %v1879_v0 = vmul.f32 %v3980_v49, %v4251_v63 }
 0x452   : > { %2352 = vmatpush3.bf16.xpose.msra.mxu0 %v2105_v28  ;;  %v2021_v24 = vmul.f32 %v1989_v39, %v1893_v20  ;;  %v1973_v9 = vmin.f32 %v1941_v34, 6.0  ;;  %v2065_v43 = vpack.c.bf16 %v2035_v51, %v2034_v16  ;;  %v1958_v61 = vmax.f32 %v1926_v42, 0.0  ;;  %v4252_v20 = vld [vmem:[#allocation13_spill] sm:$0xff]  ;;  %v4254_v28 = vld [vmem:[#allocation19_spill] sm:$0xff] }
 0x453   : > { %2424 = vmatprep.subr.msk.bf16.mxu0 %vm406_vm0, %v2073_v58  ;;  %v2004_v5 = vmul.f32 %v1972_v1, %v1876_v62  ;;  %v1959_v41 = vmax.f32 %v1927_v3, 0.0  ;;  %v2052_v23 = vmul.f32 0.16666667, %v2020_v50  ;;  %v1910_v11 = vadd.f32 3.0, %v1878_v46 }
 0x454   : > { %v2005_v52 = vmul.f32 %v1973_v9, %v1877_v40  ;;  %v1911_v19 = vadd.f32 3.0, %v1879_v0  ;;  %v2053_v13 = vmul.f32 0.16666667, %v2021_v24  ;;  %v1990_v2 = vmin.f32 %v1958_v61, 6.0 }
 0x455   : > { %v1991_v45 = vmin.f32 %v1959_v41, 6.0  ;;  %v1896_v57 = vmul.f32 %v3980_v49, %v3933_v8  ;;  %v2036_v29 = vmul.f32 0.16666667, %v2004_v5  ;;  %v1942_v32 = vmax.f32 %v1910_v11, 0.0 }
 0x456   : > { %v2037_v37 = vmul.f32 0.16666667, %v2005_v52  ;;  %v1943_v33 = vmax.f32 %v1911_v19, 0.0  ;;  %v2108_v18 = vsel %vm406_vm0, %v2065_v43, 0  ;;  %v1897_v15 = vmul.f32 %v3980_v49, %v3938_v10 }
 0x457   : > { %v1928_v48 = vadd.f32 3.0, %v1896_v57  ;;  %v2022_v59 = vmul.f32 %v1990_v2, %v1894_v14  ;;  %v1974_v4 = vmin.f32 %v1942_v32, 6.0  ;;  %v1880_v7 = vmul.f32 %v3980_v49, %v4252_v20 }
 0x458   : > { %v1975_v55 = vmin.f32 %v1943_v33, 6.0  ;;  %v2074_v26 = vpack.c.bf16 %v2053_v13, %v2052_v23  ;;  %v2023_v27 = vmul.f32 %v1991_v45, %v1895_v54  ;;  %v1929_v60 = vadd.f32 3.0, %v1897_v15 }
 0x459   : > { %v1960_v8 = vmax.f32 %v1928_v48, 0.0  ;;  %v2066_v62 = vpack.c.bf16 %v2037_v37, %v2036_v29  ;;  %v2006_v6 = vmul.f32 %v1974_v4, %v1878_v46  ;;  %v1881_v21 = vmul.f32 %v3980_v49, %v4253_v31 }
 0x45a   : > { %2354 = vmatpush3.bf16.xpose.msra.mxu0 %v2108_v18  ;;  %v2007_v10 = vmul.f32 %v1975_v55, %v1879_v0  ;;  %v1961_v53 = vmax.f32 %v1929_v60, 0.0  ;;  %v1912_v58 = vadd.f32 3.0, %v1880_v7  ;;  %v2054_v38 = vmul.f32 0.16666667, %v2022_v59  ;;  %v2083_v60 = vpop.permute.xlu1 %2082 }
 0x45b   : > { %2425 = vmatprep.subr.msk.bf16.mxu0 %vm406_vm0, %v2074_v26  ;;  %v1992_v40 = vmin.f32 %v1960_v8, 6.0  ;;  %v1913_v36 = vadd.f32 3.0, %v1881_v21  ;;  %v1898_v16 = vmul.f32 %v3980_v49, %v3941_v35  ;;  %v2055_v51 = vmul.f32 0.16666667, %v2023_v27 }
 0x45c   : > { %v1993_v47 = vmin.f32 %v1961_v53, 6.0  ;;  %v1944_v22 = vmax.f32 %v1912_v58, 0.0  ;;  %v1899_v12 = vmul.f32 %v3980_v49, %v3946_v17  ;;  %v2111_v30 = vsel %vm406_vm0, %v2066_v62, 0  ;;  %v2489_v53 = vld [vmem:[%s2771_s27] sm:$0xff] }
 0x45d   : > { %v1945_v14 = vmax.f32 %v1913_v36, 0.0  ;;  %v1930_v54 = vadd.f32 3.0, %v1898_v16  ;;  %v1882_v39 = vmul.f32 %v3980_v49, %v4254_v28  ;;  %v2038_v34 = vmul.f32 0.16666667, %v2006_v6 }
 0x45e   : > { %v2039_v56 = vmul.f32 0.16666667, %v2007_v10  ;;  %v2024_v46 = vmul.f32 %v1992_v40, %v1896_v57  ;;  %v1931_v50 = vadd.f32 3.0, %v1899_v12  ;;  %v2025_v1 = vmul.f32 %v1993_v47, %v1897_v15  ;;  %v2088_v31 = vpop.permute.xlu1 %2087 }
 0x45f   : > { %v1976_v42 = vmin.f32 %v1944_v22, 6.0  ;;  %v1977_v35 = vmin.f32 %v1945_v14, 6.0  ;;  %v1883_v3 = vmul.f32 %v3980_v49, %v4231_v44  ;;  %v2075_v24 = vpack.c.bf16 %v2055_v51, %v2054_v38  ;;  %v2491_v51 = vld [vmem:[%s2771_s27 + $0x10] sm:$0xff]  ;;  %v2492_v22 = vld [vmem:[%s2771_s27 + $0x18] sm:$0xff] }
 0x460   : > { %v1962_v9 = vmax.f32 %v1930_v54, 0.0  ;;  %v1963_v17 = vmax.f32 %v1931_v50, 0.0  ;;  %v1914_v63 = vadd.f32 3.0, %v1882_v39  ;;  %v2067_v43 = vpack.c.bf16 %v2039_v56, %v2038_v34 }
 0x461   : > { %v1915_v0 = vadd.f32 3.0, %v1883_v3  ;;  %v2056_v5 = vmul.f32 0.16666667, %v2024_v46  ;;  %v2057_v61 = vmul.f32 0.16666667, %v2025_v1  ;;  %v2008_v41 = vmul.f32 %v1976_v42, %v1880_v7 }
 0x462   : > { %2356 = vmatpush3.bf16.xpose.msra.mxu0 %v2111_v30  ;;  %v2009_v23 = vmul.f32 %v1977_v35, %v1881_v21  ;;  %v1994_v52 = vmin.f32 %v1962_v9, 6.0  ;;  %v1995_v11 = vmin.f32 %v1963_v17, 6.0  ;;  %v1946_v19 = vmax.f32 %v1914_v63, 0.0 }
 0x463   : > { %2426 = vmatprep.subr.msk.bf16.mxu0 %vm406_vm0, %v2075_v24  ;;  %v1947_v13 = vmax.f32 %v1915_v0, 0.0  ;;  %v2114_v2 = vsel %vm406_vm0, %v2067_v43, 0  ;;  %v2076_v44 = vpack.c.bf16 %v2057_v61, %v2056_v5  ;;  %v2040_v49 = vmul.f32 0.16666667, %v2008_v41 }
 0x464   : > { %v2041_v45 = vmul.f32 0.16666667, %v2009_v23  ;;  %v2026_v57 = vmul.f32 %v1994_v52, %v1898_v16  ;;  %v2027_v29 = vmul.f32 %v1995_v11, %v1899_v12  ;;  %v1978_v37 = vmin.f32 %v1946_v19, 6.0 }
 0x465   : > { %v1979_v32 = vmin.f32 %v1947_v13, 6.0 }
 0x466   : > { %v2068_v33 = vpack.c.bf16 %v2041_v45, %v2040_v49  ;;  %v2058_v18 = vmul.f32 0.16666667, %v2026_v57  ;;  %v2059_v15 = vmul.f32 0.16666667, %v2027_v29  ;;  %v2010_v48 = vmul.f32 %v1978_v37, %v1882_v39 }
 0x467   : > { %v2011_v59 = vmul.f32 %v1979_v32, %v1883_v3 }
 0x468   : > { %v2117_v4 = vsel %vm406_vm0, %v2068_v33, 0  ;;  %v2077_v55 = vpack.c.bf16 %v2059_v15, %v2058_v18  ;;  %v2042_v20 = vmul.f32 0.16666667, %v2010_v48 }
 0x469   : > { %v2043_v7 = vmul.f32 0.16666667, %v2011_v59 }
 0x46a   : > { %2358 = vmatpush3.bf16.xpose.msra.mxu0 %v2114_v2 }
 0x46b   : > { %2427 = vmatprep.subr.msk.bf16.mxu0 %vm406_vm0, %v2076_v44  ;;  %v2069_v26 = vpack.c.bf16 %v2043_v7, %v2042_v20 }
 0x46d   : > { %v2120_v27 = vsel %vm406_vm0, %v2069_v26, 0 }
 0x472   : > { %2360 = vmatpush3.bf16.xpose.msra.mxu0 %v2117_v4 }
 0x473   : > { %2428 = vmatprep.subr.msk.bf16.mxu0 %vm406_vm0, %v2077_v55 }
 0x47a   : > { %2362 = vmatpush3.bf16.xpose.msra.mxu0 %v2120_v27 }
 0x481   : > { %2364 = vmatmul.mubr.msk.bf16.vlgmr.msra.gmra.mrb[32].mxu0 %vm406_vm0, %v3966_v25  ;;  %v2490_v25 = vld [vmem:[%s2771_s27 + $0x8] sm:$0xff] }
 0x554   : > { %v2180_v8 = vpop.f32.mrb[32].mxu0 }
 0x555   : > { %v2181_v62 = vadd.f32 %v2180_v8, %v2083_v60  ;;  %v2182_v6 = vpop.f32.mrb[33].mxu0 }
 0x556   : > { %v2183_v21 = vadd.f32 %v2182_v6, %v2083_v60  ;;  %v2184_v10 = vpop.f32.mrb[34].mxu0 }
 0x557   : > { %v2189_v40 = vadd.f32 %v2489_v53, %v2181_v62  ;;  %v2185_v58 = vadd.f32 %v2184_v10, %v2088_v31  ;;  %v2186_v38 = vpop.f32.mrb[35].mxu0 }
 0x558   : > { %v2190_v36 = vadd.f32 %v2490_v25, %v2183_v21  ;;  %v2187_v16 = vadd.f32 %v2186_v38, %v2088_v31 }
 0x559   : > { %2193 = vst [vmem:[%s404_s19] sm:$0xff] %v2189_v40  ;;  %v2191_v47 = vadd.f32 %v2491_v51, %v2185_v58 }
 0x55a   : > { %2194 = vst [vmem:[%s404_s19 + $0x8] sm:$0xff] %v2190_v36  ;;  %v2192_v12 = vadd.f32 %v2492_v22, %v2187_v16 }
 0x55b   : > { %2195 = vst [vmem:[%s404_s19 + $0x10] sm:$0xff] %v2191_v47 }
 0x55c   : > { %2196 = vst [vmem:[%s404_s19 + $0x18] sm:$0xff] %v2192_v12 }
 0x55d   : > { %2536 = shalt.err (!%p2533_p2)
}
 0x55e   : > { %s2537_s27 = scalar_lea.hbm %s4075_s21, 512  ;;  %s2541_s12 = scalar_lea.hbm %s4131_s11, 1024 }
 0x55f   : > { %p2538_p4 = scmp.ne.s32.totalorder %s4075_s21, %s2537_s27  ;;  %p2542_p9 = scmp.lt.u32.totalorder %s4075_s21, %s4131_s11 }
 0x560   : > { %p2543_p1 = scmp.lt.u32.totalorder %s2541_s12, %s2537_s27  ;;  %p2545_p6 = scmp.lt.u32.totalorder %s2537_s27, %s4075_s21 }
 0x561   : > { %p2539_p5 = pnand %p2538_p4, %p4255_p11 }
 0x562   : > { %p2544_p3 = por %p2543_p1, %p2542_p9 }
 0x563   : > { %p2540_p7 = pneg %p2539_p5 }
 0x564   : > { %p2546_p12 = por %p2545_p6, %p2544_p3 }
 0x566   : > { %p2547_p13 = pnand %p2546_p12, %p2540_p7 }
 0x568   : > { %2550 = shalt.err (!%p2547_p13)
}
 0x569   : > { %s2599_s16 = smov 256   ;;  %s2600_s14 = smov 16  }
 0x56a   : > { %2431 = dma.vmem_to_hbm [thread:$0]  (%p4255_p11), %s4068_s26, 512, %s4075_s21, %s2198_s25, %s2599_s16, %s2599_s16, %s2600_s14  }
 0x56b PF: > { %s2226_s13 = sand.u32 1, %s2577_s17   ;;  %p4256_p8 = scmp.ne.s32.totalorder %s4164_s30, 0 }
 0x56c   : > { %p4257_p10 = scmp.ge.s32.totalorder %s2589_s20, 2  ;;  %s2227_s27 = scalar_lea.sflag [#allocation5], %s2226_s13 }
 0x56e   : > { %p2438_p0 = pnand %p4257_p10, %p4256_p8 }
 0x570   : > { %2572 = dma.done.wait (!%p2438_p0), %s2227_s27, 512  }
 0x571   : > { %2574 = vsyncadd (!%p2438_p0), %s2227_s27, 4294966784  ;;  %s4258_s19 = sld [smem:[#allocation9_spill]]  ;;  %s4259_s28 = sld [smem:[#allocation10_spill]] }
 0x572   : > { %p24_p2 = scmp.ge.s32.totalorder %s2686_s23, 4   ;;  %s4260_s17 = smov %s2581_s18 }
 0x573   : > { %s4263_s20 = smov %s2686_s23 }
 0x574   :  { %26 = sbr.rel (!%p24_p2) target bundleno = 5 (0x5), region = 111 }
 0x577   : > { %s4261_s18 = smov %s4258_s19  ;;  %s4262_s19 = smov %s4259_s28 }
 0x57b   :  { %2232 = vsyncpa [#allocation4], 1 }
 0x57c   :  { %2234 = vsyncpa [#allocation4 + $0x1], 1 }
 0x57d   :  { %2235 = vsyncpa [#allocation5], 1 }
 0x57e   :  { %2237 = vsyncpa [#allocation5 + $0x1], 1 }

</bundles_post_ra>
